<compile_context>
chip_gen: v7x
topology: tpu7x:2x2x1
jax: 0.10.0
libtpu: 0.0.40
codegen_flags: <defaults>
</compile_context>

<pallas_src>
import functools

import numpy as np
import jax
import jax.numpy as jnp
from jax.experimental import pallas as pl
from jax.experimental.pallas import tpu as pltpu

BN_EPS = 1e-5
LANE = 128        # padded width of every activation / weight tile
N_LAYERS = 8


def _mlp_kernel(x_ref, w_hbm, b_ref, o_ref, wbuf, sem, *, labels: int):
    """x_ref : [B, 128]      f32  VMEM (features zero-padded to 128 lanes)
       w_hbm : [8, 128, 128] bf16 HBM (memory_space=ANY); layer i = w_hbm[i]
       b_ref : [16, 128]     f32  VMEM; rows 0..7 biases, row 8 gamma, row 9 beta
       o_ref : [B, 128]      f32  VMEM; lane-dense output, cols >= labels don't-care
       wbuf  : [2, 128, 128] bf16 VMEM scratch (per-layer weight double buffer)
       sem   : DMA semaphores (2,)"""
    # Prime the weight pipeline: start fetching W0 immediately.
    pltpu.make_async_copy(w_hbm.at[0], wbuf.at[0], sem.at[0]).start()

    h = x_ref[...]                                            # [B, 128] f32
    inv_b = jnp.float32(1.0 / h.shape[0])

    y = h
    for i in range(N_LAYERS):                                 # static unroll (8 layers)
        slot = i & 1
        pltpu.make_async_copy(w_hbm.at[i], wbuf.at[slot], sem.at[slot]).wait()
        if i + 1 < N_LAYERS:                                  # prefetch next layer's weights
            pltpu.make_async_copy(w_hbm.at[i + 1], wbuf.at[1 - slot],
                                  sem.at[1 - slot]).start()
        # bf16 MXU operands, f32 accumulation.
        y = jnp.dot(h.astype(jnp.bfloat16), wbuf[slot],
                    preferred_element_type=jnp.float32) + b_ref[pl.ds(i, 1), :]
        if i < N_LAYERS - 1:                                  # fc1..fc7 + relu
            h = jnp.maximum(y, 0.0)

    # BatchNorm1d, training-mode batch statistics, two-pass (numerically safe) variance.
    mean = jnp.sum(y, axis=0, keepdims=True) * inv_b
    d = y - mean
    var = jnp.sum(d * d, axis=0, keepdims=True) * inv_b
    yn = d * jax.lax.rsqrt(var + BN_EPS)
    yn = yn * b_ref[pl.ds(8, 1), :] + b_ref[pl.ds(9, 1), :]   # gamma, beta

    # Softmax over the first `labels` lanes only (padded lanes masked out).
    col = jax.lax.broadcasted_iota(jnp.int32, yn.shape, dimension=1)
    valid = col < labels
    z = jnp.where(valid, yn, jnp.float32(-1e30))
    m = jnp.max(z, axis=1, keepdims=True)
    e = jnp.where(valid, jnp.exp(z - m), 0.0)
    s = jnp.sum(e, axis=1, keepdims=True)
    o_ref[...] = e * pl.reciprocal(s, approx=True)            # divide on the EUP


def init_params(key, features: int, labels: int):
    """PyTorch-nn.Linear-style uniform init. Weights stored (in, out)."""
    dims = [(features, 128), (128, 128), (128, 10), (10, 5),
            (5, 10), (10, 100), (100, 10), (10, labels)]
    params = []
    for i, (fan_in, fan_out) in enumerate(dims):
        kw, kb = jax.random.split(jax.random.fold_in(key, i))
        bound = 1.0 / (fan_in ** 0.5)
        w = jax.random.uniform(kw, (fan_in, fan_out), jnp.float32, -bound, bound)
        b = jax.random.uniform(kb, (1, fan_out), jnp.float32, -bound, bound)
        params.append((w, b))
    gamma = jnp.ones((1, labels), jnp.float32)
    beta = jnp.zeros((1, labels), jnp.float32)
    return params, gamma, beta


def pack_params(params, gamma, beta, labels: int):
    """Pack weights/biases/affine into two padded slabs. Called ONCE (host-side),
    outside the per-call path; weights are stored bf16 for single-pass MXU."""
    w = np.zeros((N_LAYERS, LANE, LANE), np.float32)
    b = np.zeros((16, LANE), np.float32)
    for i, (wi, bi) in enumerate(params):
        kin, kout = wi.shape
        w[i, :kin, :kout] = np.asarray(wi)
        b[i, :kout] = np.asarray(bi).reshape(-1)
    b[8, :labels] = np.asarray(gamma).reshape(-1)
    b[9, :labels] = np.asarray(beta).reshape(-1)
    return jnp.asarray(w, jnp.bfloat16), jnp.asarray(b, jnp.float32)


@functools.partial(jax.jit, static_argnames=("labels",))
def net_forward(x, w_slab, b_slab, labels: int):
    """Returns the lane-padded [B, 128] softmax output; cols >= labels are 0."""
    B, F = x.shape
    assert F <= LANE, "features must fit in one lane tile for this packing"
    x_pad = jax.lax.pad(x.astype(jnp.float32), jnp.array(0.0, jnp.float32),
                        [(0, 0, 0), (0, LANE - F, 0)])

    vmem = pl.BlockSpec(memory_space=pltpu.MemorySpace.VMEM)
    return pl.pallas_call(
        functools.partial(_mlp_kernel, labels=labels),
        out_shape=jax.ShapeDtypeStruct((B, LANE), jnp.float32),
        in_specs=[vmem,                                  # x (auto-DMA'd, 4 KiB)
                  pl.BlockSpec(memory_space=pl.ANY),     # weight slab stays in HBM
                  vmem],                                 # bias/gamma/beta slab (8 KiB)
        out_specs=vmem,
        scratch_shapes=[pltpu.VMEM((2, LANE, LANE), jnp.bfloat16),
                        pltpu.SemaphoreType.DMA((2,))],
    )(x_pad, w_slab, b_slab)


def _reference_forward(x, params, gamma, beta):
    """Pure-JAX reference: same math as the PyTorch module in training mode,
    mirroring the kernel's bf16-MXU-operand / f32-accumulation choice."""
    h = x.astype(jnp.float32)
    for i, (w, b) in enumerate(params):
        h = jnp.dot(h.astype(jnp.bfloat16), w.astype(jnp.bfloat16),
                    preferred_element_type=jnp.float32) + b
        if i < N_LAYERS - 1:
            h = jnp.maximum(h, 0.0)
    mean = jnp.mean(h, axis=0, keepdims=True)
    var = jnp.mean((h - mean) ** 2, axis=0, keepdims=True)
    h = (h - mean) * jax.lax.rsqrt(var + BN_EPS) * gamma + beta
    return jax.nn.softmax(h, axis=1)


if __name__ == "__main__":
    features, labels, batch = 16, 6, 8

    key = jax.random.PRNGKey(0)
    kx, kp = jax.random.split(key)
    x = jax.random.normal(kx, (batch, features), jnp.float32)
    params, gamma, beta = init_params(kp, features, labels)

    # Slabs are packed once here, outside the per-call (jitted) path.
    w_slab, b_slab = pack_params(params, gamma, beta, labels)

    out_padded = net_forward(x, w_slab, b_slab, labels)
    jax.block_until_ready(out_padded)
    probs = out_padded[:, :labels]           # consumer-side slice of lane-padded output

    assert probs.shape == (batch, labels)
    # softmax rows sum to ~1 (approx reciprocal -> relaxed tolerance)
    assert bool(jnp.all(jnp.abs(jnp.sum(probs, axis=1) - 1.0) < 5e-3))
    # match pure-JAX reference of the same forward pass (bf16 MXU operands, f32 accum)
    ref = _reference_forward(x, params, gamma, beta)
    assert bool(jnp.all(jnp.abs(probs - ref) < 5e-3))
    print("KERNEL_OK")
</pallas_src>

<mosaic_0001>
module attributes {stable_mosaic.version = 11 : i64} {
  func.func @_mlp_kernel(%arg0: memref<8x128xf32, #tpu.memory_space<vmem>>, %arg1: memref<8x128x128xbf16, #tpu.memory_space<any>>, %arg2: memref<16x128xf32, #tpu.memory_space<vmem>>, %arg3: memref<8x128xf32, #tpu.memory_space<vmem>>, %arg4: memref<2x128x128xbf16, #tpu.memory_space<vmem>>, %arg5: memref<2x!tpu.dma_semaphore, #tpu.memory_space<semaphore_mem>>) attributes {dimension_semantics = [], scalar_prefetch = 0 : i64, scratch_operands = 2 : i64, tpu.core_type = #tpu.core_type<tc>} {
    %c0_i32 = arith.constant 0 : i32
    %c0_i32_0 = arith.constant 0 : i32
    %c0_i32_1 = arith.constant 0 : i32
    %c0_i32_2 = arith.constant 0 : i32
    %c0_i32_3 = arith.constant 0 : i32
    %0 = tpu.memref_slice %arg1[%c0_i32, %c0_i32_2, %c0_i32_3] : memref<8x128x128xbf16, #tpu.memory_space<any>> -> memref<1x128x128xbf16, #tpu.memory_space<any>>
    %1 = tpu.memref_squeeze %0 : memref<1x128x128xbf16, #tpu.memory_space<any>> -> memref<128x128xbf16, #tpu.memory_space<any>>
    %c0_i32_4 = arith.constant 0 : i32
    %c0_i32_5 = arith.constant 0 : i32
    %2 = tpu.memref_slice %arg4[%c0_i32_0, %c0_i32_4, %c0_i32_5] : memref<2x128x128xbf16, #tpu.memory_space<vmem>> -> memref<1x128x128xbf16, #tpu.memory_space<vmem>>
    %3 = tpu.memref_squeeze %2 : memref<1x128x128xbf16, #tpu.memory_space<vmem>> -> memref<128x128xbf16, #tpu.memory_space<vmem>>
    %4 = tpu.memref_slice %arg5[%c0_i32_1] : memref<2x!tpu.dma_semaphore, #tpu.memory_space<semaphore_mem>> -> memref<1x!tpu.dma_semaphore, #tpu.memory_space<semaphore_mem>>
    %5 = tpu.memref_squeeze %4 : memref<1x!tpu.dma_semaphore, #tpu.memory_space<semaphore_mem>> -> memref<!tpu.dma_semaphore, #tpu.memory_space<semaphore_mem>>
    tpu.enqueue_dma source(%1 : memref<128x128xbf16, #tpu.memory_space<any>>) target(%3 : memref<128x128xbf16, #tpu.memory_space<vmem>>) target_semaphore(%5 : memref<!tpu.dma_semaphore, #tpu.memory_space<semaphore_mem>>)
    %c0 = arith.constant 0 : index
    %c0_6 = arith.constant 0 : index
    %6 = vector.load %arg0[%c0, %c0_6] : memref<8x128xf32, #tpu.memory_space<vmem>>, vector<8x128xf32>
    %c0_i32_7 = arith.constant 0 : i32
    %c0_i32_8 = arith.constant 0 : i32
    %c0_i32_9 = arith.constant 0 : i32
    %c0_i32_10 = arith.constant 0 : i32
    %c0_i32_11 = arith.constant 0 : i32
    %7 = tpu.memref_slice %arg1[%c0_i32_7, %c0_i32_10, %c0_i32_11] : memref<8x128x128xbf16, #tpu.memory_space<any>> -> memref<1x128x128xbf16, #tpu.memory_space<any>>
    %8 = tpu.memref_squeeze %7 : memref<1x128x128xbf16, #tpu.memory_space<any>> -> memref<128x128xbf16, #tpu.memory_space<any>>
    %c0_i32_12 = arith.constant 0 : i32
    %c0_i32_13 = arith.constant 0 : i32
    %9 = tpu.memref_slice %arg4[%c0_i32_8, %c0_i32_12, %c0_i32_13] : memref<2x128x128xbf16, #tpu.memory_space<vmem>> -> memref<1x128x128xbf16, #tpu.memory_space<vmem>>
    %10 = tpu.memref_squeeze %9 : memref<1x128x128xbf16, #tpu.memory_space<vmem>> -> memref<128x128xbf16, #tpu.memory_space<vmem>>
    %11 = tpu.memref_slice %arg5[%c0_i32_9] : memref<2x!tpu.dma_semaphore, #tpu.memory_space<semaphore_mem>> -> memref<1x!tpu.dma_semaphore, #tpu.memory_space<semaphore_mem>>
    %12 = tpu.memref_squeeze %11 : memref<1x!tpu.dma_semaphore, #tpu.memory_space<semaphore_mem>> -> memref<!tpu.dma_semaphore, #tpu.memory_space<semaphore_mem>>
    tpu.wait_dma2 semaphore(%12 : memref<!tpu.dma_semaphore, #tpu.memory_space<semaphore_mem>>) src(%8 : memref<128x128xbf16, #tpu.memory_space<any>>) dst(%10 : memref<128x128xbf16, #tpu.memory_space<vmem>>)
    %c1_i32 = arith.constant 1 : i32
    %c1_i32_14 = arith.constant 1 : i32
    %c1_i32_15 = arith.constant 1 : i32
    %c0_i32_16 = arith.constant 0 : i32
    %c0_i32_17 = arith.constant 0 : i32
    %13 = tpu.memref_slice %arg1[%c1_i32, %c0_i32_16, %c0_i32_17] : memref<8x128x128xbf16, #tpu.memory_space<any>> -> memref<1x128x128xbf16, #tpu.memory_space<any>>
    %14 = tpu.memref_squeeze %13 : memref<1x128x128xbf16, #tpu.memory_space<any>> -> memref<128x128xbf16, #tpu.memory_space<any>>
    %c0_i32_18 = arith.constant 0 : i32
    %c0_i32_19 = arith.constant 0 : i32
    %15 = tpu.memref_slice %arg4[%c1_i32_14, %c0_i32_18, %c0_i32_19] : memref<2x128x128xbf16, #tpu.memory_space<vmem>> -> memref<1x128x128xbf16, #tpu.memory_space<vmem>>
    %16 = tpu.memref_squeeze %15 : memref<1x128x128xbf16, #tpu.memory_space<vmem>> -> memref<128x128xbf16, #tpu.memory_space<vmem>>
    %17 = tpu.memref_slice %arg5[%c1_i32_15] : memref<2x!tpu.dma_semaphore, #tpu.memory_space<semaphore_mem>> -> memref<1x!tpu.dma_semaphore, #tpu.memory_space<semaphore_mem>>
    %18 = tpu.memref_squeeze %17 : memref<1x!tpu.dma_semaphore, #tpu.memory_space<semaphore_mem>> -> memref<!tpu.dma_semaphore, #tpu.memory_space<semaphore_mem>>
    tpu.enqueue_dma source(%14 : memref<128x128xbf16, #tpu.memory_space<any>>) target(%16 : memref<128x128xbf16, #tpu.memory_space<vmem>>) target_semaphore(%18 : memref<!tpu.dma_semaphore, #tpu.memory_space<semaphore_mem>>)
    %19 = arith.truncf %6 : vector<8x128xf32> to vector<8x128xbf16>
    %c0_20 = arith.constant 0 : index
    %c0_21 = arith.constant 0 : index
    %c0_22 = arith.constant 0 : index
    %20 = vector.load %arg4[%c0_20, %c0_21, %c0_22] : memref<2x128x128xbf16, #tpu.memory_space<vmem>>, vector<1x128x128xbf16>
    %21 = vector.shape_cast %20 : vector<1x128x128xbf16> to vector<128x128xbf16>
    %cst = arith.constant dense<0.000000e+00> : vector<8x128xf32>
    %22 = tpu.matmul %19, %21, %cst {dimension_numbers = #tpu.dot_dimension_numbers<[1], [0], [0], [1], [0, 0, 1, 1], [], []>} : vector<8x128xbf16>, vector<128x128xbf16>, vector<8x128xf32> -> vector<8x128xf32>
    %c0_23 = arith.constant 0 : index
    %c0_24 = arith.constant 0 : index
    %23 = vector.load %arg2[%c0_23, %c0_24] : memref<16x128xf32, #tpu.memory_space<vmem>>, vector<1x128xf32>
    %24 = vector.broadcast %23 : vector<1x128xf32> to vector<8x128xf32>
    %25 = arith.addf %22, %24 : vector<8x128xf32>
    %cst_25 = arith.constant 0.000000e+00 : f32
    %26 = vector.broadcast %cst_25 : f32 to vector<8x128xf32>
    %27 = arith.maximumf %25, %26 : vector<8x128xf32>
    %c1_i32_26 = arith.constant 1 : i32
    %c1_i32_27 = arith.constant 1 : i32
    %c1_i32_28 = arith.constant 1 : i32
    %c0_i32_29 = arith.constant 0 : i32
    %c0_i32_30 = arith.constant 0 : i32
    %28 = tpu.memref_slice %arg1[%c1_i32_26, %c0_i32_29, %c0_i32_30] : memref<8x128x128xbf16, #tpu.memory_space<any>> -> memref<1x128x128xbf16, #tpu.memory_space<any>>
    %29 = tpu.memref_squeeze %28 : memref<1x128x128xbf16, #tpu.memory_space<any>> -> memref<128x128xbf16, #tpu.memory_space<any>>
    %c0_i32_31 = arith.constant 0 : i32
    %c0_i32_32 = arith.constant 0 : i32
    %30 = tpu.memref_slice %arg4[%c1_i32_27, %c0_i32_31, %c0_i32_32] : memref<2x128x128xbf16, #tpu.memory_space<vmem>> -> memref<1x128x128xbf16, #tpu.memory_space<vmem>>
    %31 = tpu.memref_squeeze %30 : memref<1x128x128xbf16, #tpu.memory_space<vmem>> -> memref<128x128xbf16, #tpu.memory_space<vmem>>
    %32 = tpu.memref_slice %arg5[%c1_i32_28] : memref<2x!tpu.dma_semaphore, #tpu.memory_space<semaphore_mem>> -> memref<1x!tpu.dma_semaphore, #tpu.memory_space<semaphore_mem>>
    %33 = tpu.memref_squeeze %32 : memref<1x!tpu.dma_semaphore, #tpu.memory_space<semaphore_mem>> -> memref<!tpu.dma_semaphore, #tpu.memory_space<semaphore_mem>>
    tpu.wait_dma2 semaphore(%33 : memref<!tpu.dma_semaphore, #tpu.memory_space<semaphore_mem>>) src(%29 : memref<128x128xbf16, #tpu.memory_space<any>>) dst(%31 : memref<128x128xbf16, #tpu.memory_space<vmem>>)
    %c2_i32 = arith.constant 2 : i32
    %c0_i32_33 = arith.constant 0 : i32
    %c0_i32_34 = arith.constant 0 : i32
    %c0_i32_35 = arith.constant 0 : i32
    %c0_i32_36 = arith.constant 0 : i32
    %34 = tpu.memref_slice %arg1[%c2_i32, %c0_i32_35, %c0_i32_36] : memref<8x128x128xbf16, #tpu.memory_space<any>> -> memref<1x128x128xbf16, #tpu.memory_space<any>>
    %35 = tpu.memref_squeeze %34 : memref<1x128x128xbf16, #tpu.memory_space<any>> -> memref<128x128xbf16, #tpu.memory_space<any>>
    %c0_i32_37 = arith.constant 0 : i32
    %c0_i32_38 = arith.constant 0 : i32
    %36 = tpu.memref_slice %arg4[%c0_i32_33, %c0_i32_37, %c0_i32_38] : memref<2x128x128xbf16, #tpu.memory_space<vmem>> -> memref<1x128x128xbf16, #tpu.memory_space<vmem>>
    %37 = tpu.memref_squeeze %36 : memref<1x128x128xbf16, #tpu.memory_space<vmem>> -> memref<128x128xbf16, #tpu.memory_space<vmem>>
    %38 = tpu.memref_slice %arg5[%c0_i32_34] : memref<2x!tpu.dma_semaphore, #tpu.memory_space<semaphore_mem>> -> memref<1x!tpu.dma_semaphore, #tpu.memory_space<semaphore_mem>>
    %39 = tpu.memref_squeeze %38 : memref<1x!tpu.dma_semaphore, #tpu.memory_space<semaphore_mem>> -> memref<!tpu.dma_semaphore, #tpu.memory_space<semaphore_mem>>
    tpu.enqueue_dma source(%35 : memref<128x128xbf16, #tpu.memory_space<any>>) target(%37 : memref<128x128xbf16, #tpu.memory_space<vmem>>) target_semaphore(%39 : memref<!tpu.dma_semaphore, #tpu.memory_space<semaphore_mem>>)
    %40 = arith.truncf %27 : vector<8x128xf32> to vector<8x128xbf16>
    %c1 = arith.constant 1 : index
    %c0_39 = arith.constant 0 : index
    %c0_40 = arith.constant 0 : index
    %41 = vector.load %arg4[%c1, %c0_39, %c0_40] : memref<2x128x128xbf16, #tpu.memory_space<vmem>>, vector<1x128x128xbf16>
    %42 = vector.shape_cast %41 : vector<1x128x128xbf16> to vector<128x128xbf16>
    %cst_41 = arith.constant dense<0.000000e+00> : vector<8x128xf32>
    %43 = tpu.matmul %40, %42, %cst_41 {dimension_numbers = #tpu.dot_dimension_numbers<[1], [0], [0], [1], [0, 0, 1, 1], [], []>} : vector<8x128xbf16>, vector<128x128xbf16>, vector<8x128xf32> -> vector<8x128xf32>
    %c1_42 = arith.constant 1 : index
    %c0_43 = arith.constant 0 : index
    %44 = vector.load %arg2[%c1_42, %c0_43] : memref<16x128xf32, #tpu.memory_space<vmem>>, vector<1x128xf32>
    %45 = vector.broadcast %44 : vector<1x128xf32> to vector<8x128xf32>
    %46 = arith.addf %43, %45 : vector<8x128xf32>
    %cst_44 = arith.constant 0.000000e+00 : f32
    %47 = vector.broadcast %cst_44 : f32 to vector<8x128xf32>
    %48 = arith.maximumf %46, %47 : vector<8x128xf32>
    %c2_i32_45 = arith.constant 2 : i32
    %c0_i32_46 = arith.constant 0 : i32
    %c0_i32_47 = arith.constant 0 : i32
    %c0_i32_48 = arith.constant 0 : i32
    %c0_i32_49 = arith.constant 0 : i32
    %49 = tpu.memref_slice %arg1[%c2_i32_45, %c0_i32_48, %c0_i32_49] : memref<8x128x128xbf16, #tpu.memory_space<any>> -> memref<1x128x128xbf16, #tpu.memory_space<any>>
    %50 = tpu.memref_squeeze %49 : memref<1x128x128xbf16, #tpu.memory_space<any>> -> memref<128x128xbf16, #tpu.memory_space<any>>
    %c0_i32_50 = arith.constant 0 : i32
    %c0_i32_51 = arith.constant 0 : i32
    %51 = tpu.memref_slice %arg4[%c0_i32_46, %c0_i32_50, %c0_i32_51] : memref<2x128x128xbf16, #tpu.memory_space<vmem>> -> memref<1x128x128xbf16, #tpu.memory_space<vmem>>
    %52 = tpu.memref_squeeze %51 : memref<1x128x128xbf16, #tpu.memory_space<vmem>> -> memref<128x128xbf16, #tpu.memory_space<vmem>>
    %53 = tpu.memref_slice %arg5[%c0_i32_47] : memref<2x!tpu.dma_semaphore, #tpu.memory_space<semaphore_mem>> -> memref<1x!tpu.dma_semaphore, #tpu.memory_space<semaphore_mem>>
    %54 = tpu.memref_squeeze %53 : memref<1x!tpu.dma_semaphore, #tpu.memory_space<semaphore_mem>> -> memref<!tpu.dma_semaphore, #tpu.memory_space<semaphore_mem>>
    tpu.wait_dma2 semaphore(%54 : memref<!tpu.dma_semaphore, #tpu.memory_space<semaphore_mem>>) src(%50 : memref<128x128xbf16, #tpu.memory_space<any>>) dst(%52 : memref<128x128xbf16, #tpu.memory_space<vmem>>)
    %c3_i32 = arith.constant 3 : i32
    %c1_i32_52 = arith.constant 1 : i32
    %c1_i32_53 = arith.constant 1 : i32
    %c0_i32_54 = arith.constant 0 : i32
    %c0_i32_55 = arith.constant 0 : i32
    %55 = tpu.memref_slice %arg1[%c3_i32, %c0_i32_54, %c0_i32_55] : memref<8x128x128xbf16, #tpu.memory_space<any>> -> memref<1x128x128xbf16, #tpu.memory_space<any>>
    %56 = tpu.memref_squeeze %55 : memref<1x128x128xbf16, #tpu.memory_space<any>> -> memref<128x128xbf16, #tpu.memory_space<any>>
    %c0_i32_56 = arith.constant 0 : i32
    %c0_i32_57 = arith.constant 0 : i32
    %57 = tpu.memref_slice %arg4[%c1_i32_52, %c0_i32_56, %c0_i32_57] : memref<2x128x128xbf16, #tpu.memory_space<vmem>> -> memref<1x128x128xbf16, #tpu.memory_space<vmem>>
    %58 = tpu.memref_squeeze %57 : memref<1x128x128xbf16, #tpu.memory_space<vmem>> -> memref<128x128xbf16, #tpu.memory_space<vmem>>
    %59 = tpu.memref_slice %arg5[%c1_i32_53] : memref<2x!tpu.dma_semaphore, #tpu.memory_space<semaphore_mem>> -> memref<1x!tpu.dma_semaphore, #tpu.memory_space<semaphore_mem>>
    %60 = tpu.memref_squeeze %59 : memref<1x!tpu.dma_semaphore, #tpu.memory_space<semaphore_mem>> -> memref<!tpu.dma_semaphore, #tpu.memory_space<semaphore_mem>>
    tpu.enqueue_dma source(%56 : memref<128x128xbf16, #tpu.memory_space<any>>) target(%58 : memref<128x128xbf16, #tpu.memory_space<vmem>>) target_semaphore(%60 : memref<!tpu.dma_semaphore, #tpu.memory_space<semaphore_mem>>)
    %61 = arith.truncf %48 : vector<8x128xf32> to vector<8x128xbf16>
    %c0_58 = arith.constant 0 : index
    %c0_59 = arith.constant 0 : index
    %c0_60 = arith.constant 0 : index
    %62 = vector.load %arg4[%c0_58, %c0_59, %c0_60] : memref<2x128x128xbf16, #tpu.memory_space<vmem>>, vector<1x128x128xbf16>
    %63 = vector.shape_cast %62 : vector<1x128x128xbf16> to vector<128x128xbf16>
    %cst_61 = arith.constant dense<0.000000e+00> : vector<8x128xf32>
    %64 = tpu.matmul %61, %63, %cst_61 {dimension_numbers = #tpu.dot_dimension_numbers<[1], [0], [0], [1], [0, 0, 1, 1], [], []>} : vector<8x128xbf16>, vector<128x128xbf16>, vector<8x128xf32> -> vector<8x128xf32>
    %c2 = arith.constant 2 : index
    %c0_62 = arith.constant 0 : index
    %65 = vector.load %arg2[%c2, %c0_62] : memref<16x128xf32, #tpu.memory_space<vmem>>, vector<1x128xf32>
    %66 = vector.broadcast %65 : vector<1x128xf32> to vector<8x128xf32>
    %67 = arith.addf %64, %66 : vector<8x128xf32>
    %cst_63 = arith.constant 0.000000e+00 : f32
    %68 = vector.broadcast %cst_63 : f32 to vector<8x128xf32>
    %69 = arith.maximumf %67, %68 : vector<8x128xf32>
    %c3_i32_64 = arith.constant 3 : i32
    %c1_i32_65 = arith.constant 1 : i32
    %c1_i32_66 = arith.constant 1 : i32
    %c0_i32_67 = arith.constant 0 : i32
    %c0_i32_68 = arith.constant 0 : i32
    %70 = tpu.memref_slice %arg1[%c3_i32_64, %c0_i32_67, %c0_i32_68] : memref<8x128x128xbf16, #tpu.memory_space<any>> -> memref<1x128x128xbf16, #tpu.memory_space<any>>
    %71 = tpu.memref_squeeze %70 : memref<1x128x128xbf16, #tpu.memory_space<any>> -> memref<128x128xbf16, #tpu.memory_space<any>>
    %c0_i32_69 = arith.constant 0 : i32
    %c0_i32_70 = arith.constant 0 : i32
    %72 = tpu.memref_slice %arg4[%c1_i32_65, %c0_i32_69, %c0_i32_70] : memref<2x128x128xbf16, #tpu.memory_space<vmem>> -> memref<1x128x128xbf16, #tpu.memory_space<vmem>>
    %73 = tpu.memref_squeeze %72 : memref<1x128x128xbf16, #tpu.memory_space<vmem>> -> memref<128x128xbf16, #tpu.memory_space<vmem>>
    %74 = tpu.memref_slice %arg5[%c1_i32_66] : memref<2x!tpu.dma_semaphore, #tpu.memory_space<semaphore_mem>> -> memref<1x!tpu.dma_semaphore, #tpu.memory_space<semaphore_mem>>
    %75 = tpu.memref_squeeze %74 : memref<1x!tpu.dma_semaphore, #tpu.memory_space<semaphore_mem>> -> memref<!tpu.dma_semaphore, #tpu.memory_space<semaphore_mem>>
    tpu.wait_dma2 semaphore(%75 : memref<!tpu.dma_semaphore, #tpu.memory_space<semaphore_mem>>) src(%71 : memref<128x128xbf16, #tpu.memory_space<any>>) dst(%73 : memref<128x128xbf16, #tpu.memory_space<vmem>>)
    %c4_i32 = arith.constant 4 : i32
    %c0_i32_71 = arith.constant 0 : i32
    %c0_i32_72 = arith.constant 0 : i32
    %c0_i32_73 = arith.constant 0 : i32
    %c0_i32_74 = arith.constant 0 : i32
    %76 = tpu.memref_slice %arg1[%c4_i32, %c0_i32_73, %c0_i32_74] : memref<8x128x128xbf16, #tpu.memory_space<any>> -> memref<1x128x128xbf16, #tpu.memory_space<any>>
    %77 = tpu.memref_squeeze %76 : memref<1x128x128xbf16, #tpu.memory_space<any>> -> memref<128x128xbf16, #tpu.memory_space<any>>
    %c0_i32_75 = arith.constant 0 : i32
    %c0_i32_76 = arith.constant 0 : i32
    %78 = tpu.memref_slice %arg4[%c0_i32_71, %c0_i32_75, %c0_i32_76] : memref<2x128x128xbf16, #tpu.memory_space<vmem>> -> memref<1x128x128xbf16, #tpu.memory_space<vmem>>
    %79 = tpu.memref_squeeze %78 : memref<1x128x128xbf16, #tpu.memory_space<vmem>> -> memref<128x128xbf16, #tpu.memory_space<vmem>>
    %80 = tpu.memref_slice %arg5[%c0_i32_72] : memref<2x!tpu.dma_semaphore, #tpu.memory_space<semaphore_mem>> -> memref<1x!tpu.dma_semaphore, #tpu.memory_space<semaphore_mem>>
    %81 = tpu.memref_squeeze %80 : memref<1x!tpu.dma_semaphore, #tpu.memory_space<semaphore_mem>> -> memref<!tpu.dma_semaphore, #tpu.memory_space<semaphore_mem>>
    tpu.enqueue_dma source(%77 : memref<128x128xbf16, #tpu.memory_space<any>>) target(%79 : memref<128x128xbf16, #tpu.memory_space<vmem>>) target_semaphore(%81 : memref<!tpu.dma_semaphore, #tpu.memory_space<semaphore_mem>>)
    %82 = arith.truncf %69 : vector<8x128xf32> to vector<8x128xbf16>
    %c1_77 = arith.constant 1 : index
    %c0_78 = arith.constant 0 : index
    %c0_79 = arith.constant 0 : index
    %83 = vector.load %arg4[%c1_77, %c0_78, %c0_79] : memref<2x128x128xbf16, #tpu.memory_space<vmem>>, vector<1x128x128xbf16>
    %84 = vector.shape_cast %83 : vector<1x128x128xbf16> to vector<128x128xbf16>
    %cst_80 = arith.constant dense<0.000000e+00> : vector<8x128xf32>
    %85 = tpu.matmul %82, %84, %cst_80 {dimension_numbers = #tpu.dot_dimension_numbers<[1], [0], [0], [1], [0, 0, 1, 1], [], []>} : vector<8x128xbf16>, vector<128x128xbf16>, vector<8x128xf32> -> vector<8x128xf32>
    %c3 = arith.constant 3 : index
    %c0_81 = arith.constant 0 : index
    %86 = vector.load %arg2[%c3, %c0_81] : memref<16x128xf32, #tpu.memory_space<vmem>>, vector<1x128xf32>
    %87 = vector.broadcast %86 : vector<1x128xf32> to vector<8x128xf32>
    %88 = arith.addf %85, %87 : vector<8x128xf32>
    %cst_82 = arith.constant 0.000000e+00 : f32
    %89 = vector.broadcast %cst_82 : f32 to vector<8x128xf32>
    %90 = arith.maximumf %88, %89 : vector<8x128xf32>
    %c4_i32_83 = arith.constant 4 : i32
    %c0_i32_84 = arith.constant 0 : i32
    %c0_i32_85 = arith.constant 0 : i32
    %c0_i32_86 = arith.constant 0 : i32
    %c0_i32_87 = arith.constant 0 : i32
    %91 = tpu.memref_slice %arg1[%c4_i32_83, %c0_i32_86, %c0_i32_87] : memref<8x128x128xbf16, #tpu.memory_space<any>> -> memref<1x128x128xbf16, #tpu.memory_space<any>>
    %92 = tpu.memref_squeeze %91 : memref<1x128x128xbf16, #tpu.memory_space<any>> -> memref<128x128xbf16, #tpu.memory_space<any>>
    %c0_i32_88 = arith.constant 0 : i32
    %c0_i32_89 = arith.constant 0 : i32
    %93 = tpu.memref_slice %arg4[%c0_i32_84, %c0_i32_88, %c0_i32_89] : memref<2x128x128xbf16, #tpu.memory_space<vmem>> -> memref<1x128x128xbf16, #tpu.memory_space<vmem>>
    %94 = tpu.memref_squeeze %93 : memref<1x128x128xbf16, #tpu.memory_space<vmem>> -> memref<128x128xbf16, #tpu.memory_space<vmem>>
    %95 = tpu.memref_slice %arg5[%c0_i32_85] : memref<2x!tpu.dma_semaphore, #tpu.memory_space<semaphore_mem>> -> memref<1x!tpu.dma_semaphore, #tpu.memory_space<semaphore_mem>>
    %96 = tpu.memref_squeeze %95 : memref<1x!tpu.dma_semaphore, #tpu.memory_space<semaphore_mem>> -> memref<!tpu.dma_semaphore, #tpu.memory_space<semaphore_mem>>
    tpu.wait_dma2 semaphore(%96 : memref<!tpu.dma_semaphore, #tpu.memory_space<semaphore_mem>>) src(%92 : memref<128x128xbf16, #tpu.memory_space<any>>) dst(%94 : memref<128x128xbf16, #tpu.memory_space<vmem>>)
    %c5_i32 = arith.constant 5 : i32
    %c1_i32_90 = arith.constant 1 : i32
    %c1_i32_91 = arith.constant 1 : i32
    %c0_i32_92 = arith.constant 0 : i32
    %c0_i32_93 = arith.constant 0 : i32
    %97 = tpu.memref_slice %arg1[%c5_i32, %c0_i32_92, %c0_i32_93] : memref<8x128x128xbf16, #tpu.memory_space<any>> -> memref<1x128x128xbf16, #tpu.memory_space<any>>
    %98 = tpu.memref_squeeze %97 : memref<1x128x128xbf16, #tpu.memory_space<any>> -> memref<128x128xbf16, #tpu.memory_space<any>>
    %c0_i32_94 = arith.constant 0 : i32
    %c0_i32_95 = arith.constant 0 : i32
    %99 = tpu.memref_slice %arg4[%c1_i32_90, %c0_i32_94, %c0_i32_95] : memref<2x128x128xbf16, #tpu.memory_space<vmem>> -> memref<1x128x128xbf16, #tpu.memory_space<vmem>>
    %100 = tpu.memref_squeeze %99 : memref<1x128x128xbf16, #tpu.memory_space<vmem>> -> memref<128x128xbf16, #tpu.memory_space<vmem>>
    %101 = tpu.memref_slice %arg5[%c1_i32_91] : memref<2x!tpu.dma_semaphore, #tpu.memory_space<semaphore_mem>> -> memref<1x!tpu.dma_semaphore, #tpu.memory_space<semaphore_mem>>
    %102 = tpu.memref_squeeze %101 : memref<1x!tpu.dma_semaphore, #tpu.memory_space<semaphore_mem>> -> memref<!tpu.dma_semaphore, #tpu.memory_space<semaphore_mem>>
    tpu.enqueue_dma source(%98 : memref<128x128xbf16, #tpu.memory_space<any>>) target(%100 : memref<128x128xbf16, #tpu.memory_space<vmem>>) target_semaphore(%102 : memref<!tpu.dma_semaphore, #tpu.memory_space<semaphore_mem>>)
    %103 = arith.truncf %90 : vector<8x128xf32> to vector<8x128xbf16>
    %c0_96 = arith.constant 0 : index
    %c0_97 = arith.constant 0 : index
    %c0_98 = arith.constant 0 : index
    %104 = vector.load %arg4[%c0_96, %c0_97, %c0_98] : memref<2x128x128xbf16, #tpu.memory_space<vmem>>, vector<1x128x128xbf16>
    %105 = vector.shape_cast %104 : vector<1x128x128xbf16> to vector<128x128xbf16>
    %cst_99 = arith.constant dense<0.000000e+00> : vector<8x128xf32>
    %106 = tpu.matmul %103, %105, %cst_99 {dimension_numbers = #tpu.dot_dimension_numbers<[1], [0], [0], [1], [0, 0, 1, 1], [], []>} : vector<8x128xbf16>, vector<128x128xbf16>, vector<8x128xf32> -> vector<8x128xf32>
    %c4 = arith.constant 4 : index
    %c0_100 = arith.constant 0 : index
    %107 = vector.load %arg2[%c4, %c0_100] : memref<16x128xf32, #tpu.memory_space<vmem>>, vector<1x128xf32>
    %108 = vector.broadcast %107 : vector<1x128xf32> to vector<8x128xf32>
    %109 = arith.addf %106, %108 : vector<8x128xf32>
    %cst_101 = arith.constant 0.000000e+00 : f32
    %110 = vector.broadcast %cst_101 : f32 to vector<8x128xf32>
    %111 = arith.maximumf %109, %110 : vector<8x128xf32>
    %c5_i32_102 = arith.constant 5 : i32
    %c1_i32_103 = arith.constant 1 : i32
    %c1_i32_104 = arith.constant 1 : i32
    %c0_i32_105 = arith.constant 0 : i32
    %c0_i32_106 = arith.constant 0 : i32
    %112 = tpu.memref_slice %arg1[%c5_i32_102, %c0_i32_105, %c0_i32_106] : memref<8x128x128xbf16, #tpu.memory_space<any>> -> memref<1x128x128xbf16, #tpu.memory_space<any>>
    %113 = tpu.memref_squeeze %112 : memref<1x128x128xbf16, #tpu.memory_space<any>> -> memref<128x128xbf16, #tpu.memory_space<any>>
    %c0_i32_107 = arith.constant 0 : i32
    %c0_i32_108 = arith.constant 0 : i32
    %114 = tpu.memref_slice %arg4[%c1_i32_103, %c0_i32_107, %c0_i32_108] : memref<2x128x128xbf16, #tpu.memory_space<vmem>> -> memref<1x128x128xbf16, #tpu.memory_space<vmem>>
    %115 = tpu.memref_squeeze %114 : memref<1x128x128xbf16, #tpu.memory_space<vmem>> -> memref<128x128xbf16, #tpu.memory_space<vmem>>
    %116 = tpu.memref_slice %arg5[%c1_i32_104] : memref<2x!tpu.dma_semaphore, #tpu.memory_space<semaphore_mem>> -> memref<1x!tpu.dma_semaphore, #tpu.memory_space<semaphore_mem>>
    %117 = tpu.memref_squeeze %116 : memref<1x!tpu.dma_semaphore, #tpu.memory_space<semaphore_mem>> -> memref<!tpu.dma_semaphore, #tpu.memory_space<semaphore_mem>>
    tpu.wait_dma2 semaphore(%117 : memref<!tpu.dma_semaphore, #tpu.memory_space<semaphore_mem>>) src(%113 : memref<128x128xbf16, #tpu.memory_space<any>>) dst(%115 : memref<128x128xbf16, #tpu.memory_space<vmem>>)
    %c6_i32 = arith.constant 6 : i32
    %c0_i32_109 = arith.constant 0 : i32
    %c0_i32_110 = arith.constant 0 : i32
    %c0_i32_111 = arith.constant 0 : i32
    %c0_i32_112 = arith.constant 0 : i32
    %118 = tpu.memref_slice %arg1[%c6_i32, %c0_i32_111, %c0_i32_112] : memref<8x128x128xbf16, #tpu.memory_space<any>> -> memref<1x128x128xbf16, #tpu.memory_space<any>>
    %119 = tpu.memref_squeeze %118 : memref<1x128x128xbf16, #tpu.memory_space<any>> -> memref<128x128xbf16, #tpu.memory_space<any>>
    %c0_i32_113 = arith.constant 0 : i32
    %c0_i32_114 = arith.constant 0 : i32
    %120 = tpu.memref_slice %arg4[%c0_i32_109, %c0_i32_113, %c0_i32_114] : memref<2x128x128xbf16, #tpu.memory_space<vmem>> -> memref<1x128x128xbf16, #tpu.memory_space<vmem>>
    %121 = tpu.memref_squeeze %120 : memref<1x128x128xbf16, #tpu.memory_space<vmem>> -> memref<128x128xbf16, #tpu.memory_space<vmem>>
    %122 = tpu.memref_slice %arg5[%c0_i32_110] : memref<2x!tpu.dma_semaphore, #tpu.memory_space<semaphore_mem>> -> memref<1x!tpu.dma_semaphore, #tpu.memory_space<semaphore_mem>>
    %123 = tpu.memref_squeeze %122 : memref<1x!tpu.dma_semaphore, #tpu.memory_space<semaphore_mem>> -> memref<!tpu.dma_semaphore, #tpu.memory_space<semaphore_mem>>
    tpu.enqueue_dma source(%119 : memref<128x128xbf16, #tpu.memory_space<any>>) target(%121 : memref<128x128xbf16, #tpu.memory_space<vmem>>) target_semaphore(%123 : memref<!tpu.dma_semaphore, #tpu.memory_space<semaphore_mem>>)
    %124 = arith.truncf %111 : vector<8x128xf32> to vector<8x128xbf16>
    %c1_115 = arith.constant 1 : index
    %c0_116 = arith.constant 0 : index
    %c0_117 = arith.constant 0 : index
    %125 = vector.load %arg4[%c1_115, %c0_116, %c0_117] : memref<2x128x128xbf16, #tpu.memory_space<vmem>>, vector<1x128x128xbf16>
    %126 = vector.shape_cast %125 : vector<1x128x128xbf16> to vector<128x128xbf16>
    %cst_118 = arith.constant dense<0.000000e+00> : vector<8x128xf32>
    %127 = tpu.matmul %124, %126, %cst_118 {dimension_numbers = #tpu.dot_dimension_numbers<[1], [0], [0], [1], [0, 0, 1, 1], [], []>} : vector<8x128xbf16>, vector<128x128xbf16>, vector<8x128xf32> -> vector<8x128xf32>
    %c5 = arith.constant 5 : index
    %c0_119 = arith.constant 0 : index
    %128 = vector.load %arg2[%c5, %c0_119] : memref<16x128xf32, #tpu.memory_space<vmem>>, vector<1x128xf32>
    %129 = vector.broadcast %128 : vector<1x128xf32> to vector<8x128xf32>
    %130 = arith.addf %127, %129 : vector<8x128xf32>
    %cst_120 = arith.constant 0.000000e+00 : f32
    %131 = vector.broadcast %cst_120 : f32 to vector<8x128xf32>
    %132 = arith.maximumf %130, %131 : vector<8x128xf32>
    %c6_i32_121 = arith.constant 6 : i32
    %c0_i32_122 = arith.constant 0 : i32
    %c0_i32_123 = arith.constant 0 : i32
    %c0_i32_124 = arith.constant 0 : i32
    %c0_i32_125 = arith.constant 0 : i32
    %133 = tpu.memref_slice %arg1[%c6_i32_121, %c0_i32_124, %c0_i32_125] : memref<8x128x128xbf16, #tpu.memory_space<any>> -> memref<1x128x128xbf16, #tpu.memory_space<any>>
    %134 = tpu.memref_squeeze %133 : memref<1x128x128xbf16, #tpu.memory_space<any>> -> memref<128x128xbf16, #tpu.memory_space<any>>
    %c0_i32_126 = arith.constant 0 : i32
    %c0_i32_127 = arith.constant 0 : i32
    %135 = tpu.memref_slice %arg4[%c0_i32_122, %c0_i32_126, %c0_i32_127] : memref<2x128x128xbf16, #tpu.memory_space<vmem>> -> memref<1x128x128xbf16, #tpu.memory_space<vmem>>
    %136 = tpu.memref_squeeze %135 : memref<1x128x128xbf16, #tpu.memory_space<vmem>> -> memref<128x128xbf16, #tpu.memory_space<vmem>>
    %137 = tpu.memref_slice %arg5[%c0_i32_123] : memref<2x!tpu.dma_semaphore, #tpu.memory_space<semaphore_mem>> -> memref<1x!tpu.dma_semaphore, #tpu.memory_space<semaphore_mem>>
    %138 = tpu.memref_squeeze %137 : memref<1x!tpu.dma_semaphore, #tpu.memory_space<semaphore_mem>> -> memref<!tpu.dma_semaphore, #tpu.memory_space<semaphore_mem>>
    tpu.wait_dma2 semaphore(%138 : memref<!tpu.dma_semaphore, #tpu.memory_space<semaphore_mem>>) src(%134 : memref<128x128xbf16, #tpu.memory_space<any>>) dst(%136 : memref<128x128xbf16, #tpu.memory_space<vmem>>)
    %c7_i32 = arith.constant 7 : i32
    %c1_i32_128 = arith.constant 1 : i32
    %c1_i32_129 = arith.constant 1 : i32
    %c0_i32_130 = arith.constant 0 : i32
    %c0_i32_131 = arith.constant 0 : i32
    %139 = tpu.memref_slice %arg1[%c7_i32, %c0_i32_130, %c0_i32_131] : memref<8x128x128xbf16, #tpu.memory_space<any>> -> memref<1x128x128xbf16, #tpu.memory_space<any>>
    %140 = tpu.memref_squeeze %139 : memref<1x128x128xbf16, #tpu.memory_space<any>> -> memref<128x128xbf16, #tpu.memory_space<any>>
    %c0_i32_132 = arith.constant 0 : i32
    %c0_i32_133 = arith.constant 0 : i32
    %141 = tpu.memref_slice %arg4[%c1_i32_128, %c0_i32_132, %c0_i32_133] : memref<2x128x128xbf16, #tpu.memory_space<vmem>> -> memref<1x128x128xbf16, #tpu.memory_space<vmem>>
    %142 = tpu.memref_squeeze %141 : memref<1x128x128xbf16, #tpu.memory_space<vmem>> -> memref<128x128xbf16, #tpu.memory_space<vmem>>
    %143 = tpu.memref_slice %arg5[%c1_i32_129] : memref<2x!tpu.dma_semaphore, #tpu.memory_space<semaphore_mem>> -> memref<1x!tpu.dma_semaphore, #tpu.memory_space<semaphore_mem>>
    %144 = tpu.memref_squeeze %143 : memref<1x!tpu.dma_semaphore, #tpu.memory_space<semaphore_mem>> -> memref<!tpu.dma_semaphore, #tpu.memory_space<semaphore_mem>>
    tpu.enqueue_dma source(%140 : memref<128x128xbf16, #tpu.memory_space<any>>) target(%142 : memref<128x128xbf16, #tpu.memory_space<vmem>>) target_semaphore(%144 : memref<!tpu.dma_semaphore, #tpu.memory_space<semaphore_mem>>)
    %145 = arith.truncf %132 : vector<8x128xf32> to vector<8x128xbf16>
    %c0_134 = arith.constant 0 : index
    %c0_135 = arith.constant 0 : index
    %c0_136 = arith.constant 0 : index
    %146 = vector.load %arg4[%c0_134, %c0_135, %c0_136] : memref<2x128x128xbf16, #tpu.memory_space<vmem>>, vector<1x128x128xbf16>
    %147 = vector.shape_cast %146 : vector<1x128x128xbf16> to vector<128x128xbf16>
    %cst_137 = arith.constant dense<0.000000e+00> : vector<8x128xf32>
    %148 = tpu.matmul %145, %147, %cst_137 {dimension_numbers = #tpu.dot_dimension_numbers<[1], [0], [0], [1], [0, 0, 1, 1], [], []>} : vector<8x128xbf16>, vector<128x128xbf16>, vector<8x128xf32> -> vector<8x128xf32>
    %c6 = arith.constant 6 : index
    %c0_138 = arith.constant 0 : index
    %149 = vector.load %arg2[%c6, %c0_138] : memref<16x128xf32, #tpu.memory_space<vmem>>, vector<1x128xf32>
    %150 = vector.broadcast %149 : vector<1x128xf32> to vector<8x128xf32>
    %151 = arith.addf %148, %150 : vector<8x128xf32>
    %cst_139 = arith.constant 0.000000e+00 : f32
    %152 = vector.broadcast %cst_139 : f32 to vector<8x128xf32>
    %153 = arith.maximumf %151, %152 : vector<8x128xf32>
    %c7_i32_140 = arith.constant 7 : i32
    %c1_i32_141 = arith.constant 1 : i32
    %c1_i32_142 = arith.constant 1 : i32
    %c0_i32_143 = arith.constant 0 : i32
    %c0_i32_144 = arith.constant 0 : i32
    %154 = tpu.memref_slice %arg1[%c7_i32_140, %c0_i32_143, %c0_i32_144] : memref<8x128x128xbf16, #tpu.memory_space<any>> -> memref<1x128x128xbf16, #tpu.memory_space<any>>
    %155 = tpu.memref_squeeze %154 : memref<1x128x128xbf16, #tpu.memory_space<any>> -> memref<128x128xbf16, #tpu.memory_space<any>>
    %c0_i32_145 = arith.constant 0 : i32
    %c0_i32_146 = arith.constant 0 : i32
    %156 = tpu.memref_slice %arg4[%c1_i32_141, %c0_i32_145, %c0_i32_146] : memref<2x128x128xbf16, #tpu.memory_space<vmem>> -> memref<1x128x128xbf16, #tpu.memory_space<vmem>>
    %157 = tpu.memref_squeeze %156 : memref<1x128x128xbf16, #tpu.memory_space<vmem>> -> memref<128x128xbf16, #tpu.memory_space<vmem>>
    %158 = tpu.memref_slice %arg5[%c1_i32_142] : memref<2x!tpu.dma_semaphore, #tpu.memory_space<semaphore_mem>> -> memref<1x!tpu.dma_semaphore, #tpu.memory_space<semaphore_mem>>
    %159 = tpu.memref_squeeze %158 : memref<1x!tpu.dma_semaphore, #tpu.memory_space<semaphore_mem>> -> memref<!tpu.dma_semaphore, #tpu.memory_space<semaphore_mem>>
    tpu.wait_dma2 semaphore(%159 : memref<!tpu.dma_semaphore, #tpu.memory_space<semaphore_mem>>) src(%155 : memref<128x128xbf16, #tpu.memory_space<any>>) dst(%157 : memref<128x128xbf16, #tpu.memory_space<vmem>>)
    %160 = arith.truncf %153 : vector<8x128xf32> to vector<8x128xbf16>
    %c1_147 = arith.constant 1 : index
    %c0_148 = arith.constant 0 : index
    %c0_149 = arith.constant 0 : index
    %161 = vector.load %arg4[%c1_147, %c0_148, %c0_149] : memref<2x128x128xbf16, #tpu.memory_space<vmem>>, vector<1x128x128xbf16>
    %162 = vector.shape_cast %161 : vector<1x128x128xbf16> to vector<128x128xbf16>
    %cst_150 = arith.constant dense<0.000000e+00> : vector<8x128xf32>
    %163 = tpu.matmul %160, %162, %cst_150 {dimension_numbers = #tpu.dot_dimension_numbers<[1], [0], [0], [1], [0, 0, 1, 1], [], []>} : vector<8x128xbf16>, vector<128x128xbf16>, vector<8x128xf32> -> vector<8x128xf32>
    %c7 = arith.constant 7 : index
    %c0_151 = arith.constant 0 : index
    %164 = vector.load %arg2[%c7, %c0_151] : memref<16x128xf32, #tpu.memory_space<vmem>>, vector<1x128xf32>
    %165 = vector.broadcast %164 : vector<1x128xf32> to vector<8x128xf32>
    %166 = arith.addf %163, %165 : vector<8x128xf32>
    %cst_152 = arith.constant dense<0.000000e+00> : vector<128xf32>
    %167 = vector.multi_reduction <add>, %166, %cst_152 [0] : vector<8x128xf32> to vector<128xf32>
    %168 = vector.shape_cast %167 : vector<128xf32> to vector<1x128xf32>
    %cst_153 = arith.constant 1.250000e-01 : f32
    %169 = vector.broadcast %cst_153 : f32 to vector<1x128xf32>
    %170 = arith.mulf %168, %169 : vector<1x128xf32>
    %171 = vector.broadcast %170 : vector<1x128xf32> to vector<8x128xf32>
    %172 = arith.subf %166, %171 : vector<8x128xf32>
    %173 = arith.mulf %172, %172 : vector<8x128xf32>
    %cst_154 = arith.constant dense<0.000000e+00> : vector<128xf32>
    %174 = vector.multi_reduction <add>, %173, %cst_154 [0] : vector<8x128xf32> to vector<128xf32>
    %175 = vector.shape_cast %174 : vector<128xf32> to vector<1x128xf32>
    %cst_155 = arith.constant 1.250000e-01 : f32
    %176 = vector.broadcast %cst_155 : f32 to vector<1x128xf32>
    %177 = arith.mulf %175, %176 : vector<1x128xf32>
    %cst_156 = arith.constant 9.99999974E-6 : f32
    %178 = vector.broadcast %cst_156 : f32 to vector<1x128xf32>
    %179 = arith.addf %177, %178 : vector<1x128xf32>
    %180 = math.rsqrt %179 : vector<1x128xf32>
    %181 = vector.broadcast %180 : vector<1x128xf32> to vector<8x128xf32>
    %182 = arith.mulf %172, %181 : vector<8x128xf32>
    %c8 = arith.constant 8 : index
    %c0_157 = arith.constant 0 : index
    %183 = vector.load %arg2[%c8, %c0_157] : memref<16x128xf32, #tpu.memory_space<vmem>>, vector<1x128xf32>
    %184 = vector.broadcast %183 : vector<1x128xf32> to vector<8x128xf32>
    %185 = arith.mulf %182, %184 : vector<8x128xf32>
    %c9 = arith.constant 9 : index
    %c0_158 = arith.constant 0 : index
    %186 = vector.load %arg2[%c9, %c0_158] : memref<16x128xf32, #tpu.memory_space<vmem>>, vector<1x128xf32>
    %187 = vector.broadcast %186 : vector<1x128xf32> to vector<8x128xf32>
    %188 = arith.addf %185, %187 : vector<8x128xf32>
    %189 = tpu.iota {dimensions = array<i32: 1>} : vector<8x128xi32>
    %c6_i32_159 = arith.constant 6 : i32
    %190 = vector.broadcast %c6_i32_159 : i32 to vector<8x128xi32>
    %191 = arith.cmpi slt, %189, %190 : vector<8x128xi32>
    %cst_160 = arith.constant -1.000000e+30 : f32
    %192 = vector.broadcast %cst_160 : f32 to vector<8x128xf32>
    %193 = arith.select %191, %188, %192 : vector<8x128xi1>, vector<8x128xf32>
    %cst_161 = arith.constant dense<0xFF800000> : vector<8xf32>
    %194 = vector.multi_reduction <maximumf>, %193, %cst_161 [1] : vector<8x128xf32> to vector<8xf32>
    %195 = vector.shape_cast %194 : vector<8xf32> to vector<8x1xf32>
    %196 = vector.broadcast %195 : vector<8x1xf32> to vector<8x128xf32>
    %197 = arith.subf %193, %196 : vector<8x128xf32>
    %198 = math.exp %197 : vector<8x128xf32>
    %cst_162 = arith.constant 0.000000e+00 : f32
    %199 = vector.broadcast %cst_162 : f32 to vector<8x128xf32>
    %200 = arith.select %191, %198, %199 : vector<8x128xi1>, vector<8x128xf32>
    %cst_163 = arith.constant dense<0.000000e+00> : vector<8xf32>
    %201 = vector.multi_reduction <add>, %200, %cst_163 [1] : vector<8x128xf32> to vector<8xf32>
    %202 = vector.shape_cast %201 : vector<8xf32> to vector<8x1xf32>
    %203 = tpu.reciprocal %202 {approx = true} : vector<8x1xf32> -> vector<8x1xf32>
    %204 = vector.broadcast %203 : vector<8x1xf32> to vector<8x128xf32>
    %205 = arith.mulf %200, %204 : vector<8x128xf32>
    %c0_164 = arith.constant 0 : index
    %c0_165 = arith.constant 0 : index
    %206 = vector.load %arg3[%c0_164, %c0_165] : memref<8x128xf32, #tpu.memory_space<vmem>>, vector<8x128xf32>
    tpu.vector_store %arg3[%c0_164, %c0_165], %205 {strides = array<i32>} : memref<8x128xf32, #tpu.memory_space<vmem>>, vector<8x128xf32>,
    return
  }
}

</mosaic_0001>

<bundles_post_ra>
// kernel: net_forward.1
= control target key start
LH: loop header
LB: loop body
LE: loop exit
PB: predicated region body
PF: predicated region fallthrough
CT: control target
= control target key end

     0   :  { %8 = vsyncpa [#allocation5], 0  ;;  %s1134_s14 = smov [#allocation2]   ;;  %s1473_s0 = inlined_call_operand.vmem [shape: f32[8,128], index: 0, kind: input, shape index: {}]   ;;  %s1474_s1 = inlined_call_operand.hbm [shape: bf16[8,128,128], index: 1, kind: input, shape index: {}]   ;;  %s1475_s2 = inlined_call_operand.vmem [shape: f32[16,128], index: 2, kind: input, shape index: {}]   ;;  %s1476_s3 = inlined_call_operand.hbm [shape: f32[8,128], index: 3, kind: output, shape index: {}]  }
   0x1   :  { %v1162_v0 = vld [vmem:[%s1473_s0] sm:$0xff]  ;;  %s21_s15 = sshll.u32 %s1134_s14, 4  ;;  %s1169_s18 = scalar_lea.hbm %s1474_s1, 1024  ;;  %s1164_s15 = int_to_ptr.vmem [resolvable:$true] %s21_s15 }
   0x2   :  { %p898_p0 = scmp.ne.s32.totalorder %s1474_s1, %s1169_s18  ;;  %s1178_s22 = scalar_lea.hbm %s1474_s1, 8192 }
   0x3   :  { %p900_p1 = scmp.lt.u32.totalorder %s1178_s22, %s1169_s18  ;;  %p901_p2 = scmp.lt.u32.totalorder %s1169_s18, %s1474_s1 }
   0x5   :  { %p902_p3 = por %p901_p2, %p900_p1 }
   0x7   :  { %p903_p4 = pnand %p902_p3, %p898_p0 }
   0x9   :  { %906 = shalt.err (!%p903_p4)  }
   0xa   :  { %s907_s27 = scalar_lea.vmem %s1164_s15, 1024  ;;  %s911_s28 = scalar_lea.vmem %s1164_s15, 2048 }
   0xb   :  { %p908_p5 = scmp.ne.s32.totalorder %s1164_s15, %s907_s27  ;;  %p912_p6 = scmp.lt.s32.totalorder %s1164_s15, %s1164_s15 }
   0xc   :  { %p913_p7 = scmp.lt.s32.totalorder %s911_s28, %s907_s27 }
   0xe   :  { %p914_p8 = por %p913_p7, %p912_p6 }
  0x10   :  { %p1196_p9 = pnand %p914_p8, %p908_p5 }
  0x12   :  { %918 = shalt.err (!%p1196_p9)  }
  0x13   :  { %24 = dma.hbm_to_vmem [thread:$0]  %s1474_s1, 1024, %s1164_s15, [#allocation3] }
  0x14   :  { %1116 = dma.done.wait [#allocation3], 1024 }
  0x15   :  { %1117 = vsyncadd [#allocation3], 4294966272  ;;  %s1135_s5 = smov [#allocation2 + $0x40]   ;;  %v1136_v1 = vmov 0.0   ;;  %vm1137_vm0 = vmmov 0   ;;  %s1214_s9 = scalar_lea.hbm %s1474_s1, 2048 }
  0x16   :  { %s40_s6 = sshll.u32 %s1135_s5, 4  ;;  %726 = vmatprep.subr.bf16.mxu0 %v1136_v1  ;;  %742 = vmatprep.mubr.msk.bf16.mxu0 %vm1137_vm0, %v1136_v1  ;;  %p920_p10 = scmp.ne.s32.totalorder %s1169_s18, %s1214_s9  ;;  %s1209_s6 = int_to_ptr.vmem [resolvable:$true] %s40_s6 }
  0x17   :  { %p923_p11 = scmp.lt.u32.totalorder %s1178_s22, %s1214_s9  ;;  %p925_p13 = scmp.lt.u32.totalorder %s1214_s9, %s1169_s18 }
  0x19   :  { %p924_p12 = por %p923_p11, %p901_p2 }
  0x1b   :  { %p926_p0 = por %p925_p13, %p924_p12 }
  0x1d   :  { %p927_p1 = pnand %p926_p0, %p920_p10 }
  0x1f   :  { %930 = shalt.err (!%p927_p1)  }
  0x20   :  { %s931_s12 = scalar_lea.vmem %s1209_s6, 1024  ;;  %p936_p4 = scmp.lt.s32.totalorder %s1209_s6, %s1164_s15 }
  0x21   :  { %p932_p3 = scmp.ne.s32.totalorder %s1209_s6, %s931_s12  ;;  %p937_p5 = scmp.lt.s32.totalorder %s911_s28, %s931_s12 }
  0x23   :  { %p938_p6 = por %p937_p5, %p936_p4 }
  0x25   :  { %p1231_p7 = pnand %p938_p6, %p932_p3 }
  0x27   :  { %942 = shalt.err (!%p1231_p7)  }
  0x28   :  { %43 = dma.hbm_to_vmem [thread:$0]  %s1169_s18, 1024, %s1209_s6, [#allocation3 + $0x1]  ;;  %v44_v10 = vpack.c.bf16 %v1162_v0, %v1162_v0  ;;  %v642_v11 = vld [vmem:[%s1475_s2] ss:$0 sm:$0xff] }
  0x29   :  { %v45_v2 = vld [vmem:[#allocation2] sm:$0xff]  ;;  %v46_v3 = vld [vmem:[#allocation2 + $0x8] sm:$0xff]  ;;  %v47_v4 = vld [vmem:[#allocation2 + $0x10] sm:$0xff] }
  0x2a   :  { %727 = vmatpush3.bf16.msra.mxu0 %v45_v2  ;;  %v48_v5 = vld [vmem:[#allocation2 + $0x18] sm:$0xff]  ;;  %v49_v6 = vld [vmem:[#allocation2 + $0x20] sm:$0xff]  ;;  %v50_v7 = vld [vmem:[#allocation2 + $0x28] sm:$0xff] }
  0x2b   :  { %728 = vmatprep.subr.bf16.mxu0 %v1136_v1  ;;  %v51_v8 = vld [vmem:[#allocation2 + $0x30] sm:$0xff]  ;;  %v52_v9 = vld [vmem:[#allocation2 + $0x38] sm:$0xff] }
  0x2e   :  { %729 = vmatpush3.bf16.msra.mxu0 %v46_v3 }
  0x2f   :  { %730 = vmatprep.subr.bf16.mxu0 %v1136_v1 }
  0x32   :  { %731 = vmatpush3.bf16.msra.mxu0 %v47_v4 }
  0x33   :  { %732 = vmatprep.subr.bf16.mxu0 %v1136_v1 }
  0x36   :  { %733 = vmatpush3.bf16.msra.mxu0 %v48_v5 }
  0x37   :  { %734 = vmatprep.subr.bf16.mxu0 %v1136_v1 }
  0x3a   :  { %735 = vmatpush3.bf16.msra.mxu0 %v49_v6 }
  0x3b   :  { %736 = vmatprep.subr.bf16.mxu0 %v1136_v1 }
  0x3e   :  { %737 = vmatpush3.bf16.msra.mxu0 %v50_v7 }
  0x3f   :  { %738 = vmatprep.subr.bf16.mxu0 %v1136_v1 }
  0x42   :  { %739 = vmatpush3.bf16.msra.mxu0 %v51_v8 }
  0x43   :  { %740 = vmatprep.subr.bf16.mxu0 %v1136_v1 }
  0x46   :  { %741 = vmatpush3.bf16.msra.mxu0 %v52_v9 }
  0x49   :  { %743 = vmatmul.mubr.bf16.vlgmr.msra.gmra.mrb[0].mxu0 %v44_v10 }
 0x11c   :  { %v92_v12 = vpop.f32.mrb[0].mxu0 }
 0x11d   :  { %v93_v13 = vadd.f32 %v642_v11, %v92_v12  ;;  %v744_v14 = vpop.f32.mrb[1].mxu0 }
 0x11e   :  { %v95_v15 = vpop.f32.mrb[2].mxu0 }
 0x11f   :  { %v98_v16 = vmax.f32 %v93_v13, 0.0  ;;  %v745_v17 = vpop.f32.mrb[3].mxu0 }
 0x120   :  { %1118 = dma.done.wait [#allocation3 + $0x1], 1024 }
 0x121   :  { %1119 = vsyncadd [#allocation3 + $0x1], 4294966272  ;;  %746 = vmatprep.subr.bf16.mxu1 %v1136_v1  ;;  %762 = vmatprep.mubr.msk.bf16.mxu1 %vm1137_vm0, %v1136_v1  ;;  %s1257_s19 = scalar_lea.hbm %s1474_s1, 3072  ;;  %p947_p8 = scmp.lt.u32.totalorder %s1214_s9, %s1474_s1 }
 0x122   :  { %p945_p2 = scmp.ne.s32.totalorder %s1214_s9, %s1257_s19  ;;  %p948_p10 = scmp.lt.u32.totalorder %s1178_s22, %s1257_s19 }
 0x123   :  { %p950_p12 = scmp.lt.u32.totalorder %s1257_s19, %s1214_s9 }
 0x124   :  { %p949_p11 = por %p948_p10, %p947_p8 }
 0x126   :  { %p951_p13 = por %p950_p12, %p949_p11 }
 0x128   :  { %p952_p0 = pnand %p951_p13, %p945_p2 }
 0x12a   :  { %955 = shalt.err (!%p952_p0)  }
 0x12b   :  { %967 = shalt.err (!%p1196_p9)  }
 0x12c   :  { %112 = dma.hbm_to_vmem [thread:$0]  %s1214_s9, 1024, %s1164_s15, [#allocation3]  ;;  %v113_v26 = vpack.c.bf16 %v98_v16, %v98_v16  ;;  %v643_v27 = vld [vmem:[%s1475_s2 + $0x1] ss:$0 sm:$0xff] }
 0x12d   :  { %v114_v18 = vld [vmem:[#allocation2 + $0x40] sm:$0xff]  ;;  %v115_v19 = vld [vmem:[#allocation2 + $0x48] sm:$0xff]  ;;  %v116_v20 = vld [vmem:[#allocation2 + $0x50] sm:$0xff] }
 0x12e   :  { %747 = vmatpush3.bf16.msra.mxu1 %v114_v18  ;;  %v117_v21 = vld [vmem:[#allocation2 + $0x58] sm:$0xff]  ;;  %v118_v22 = vld [vmem:[#allocation2 + $0x60] sm:$0xff]  ;;  %v119_v23 = vld [vmem:[#allocation2 + $0x68] sm:$0xff] }
 0x12f   :  { %748 = vmatprep.subr.bf16.mxu1 %v1136_v1  ;;  %v120_v24 = vld [vmem:[#allocation2 + $0x70] sm:$0xff]  ;;  %v121_v25 = vld [vmem:[#allocation2 + $0x78] sm:$0xff] }
 0x132   :  { %749 = vmatpush3.bf16.msra.mxu1 %v115_v19 }
 0x133   :  { %750 = vmatprep.subr.bf16.mxu1 %v1136_v1 }
 0x136   :  { %751 = vmatpush3.bf16.msra.mxu1 %v116_v20 }
 0x137   :  { %752 = vmatprep.subr.bf16.mxu1 %v1136_v1 }
 0x13a   :  { %753 = vmatpush3.bf16.msra.mxu1 %v117_v21 }
 0x13b   :  { %754 = vmatprep.subr.bf16.mxu1 %v1136_v1 }
 0x13e   :  { %755 = vmatpush3.bf16.msra.mxu1 %v118_v22 }
 0x13f   :  { %756 = vmatprep.subr.bf16.mxu1 %v1136_v1 }
 0x142   :  { %757 = vmatpush3.bf16.msra.mxu1 %v119_v23 }
 0x143   :  { %758 = vmatprep.subr.bf16.mxu1 %v1136_v1 }
 0x146   :  { %759 = vmatpush3.bf16.msra.mxu1 %v120_v24 }
 0x147   :  { %760 = vmatprep.subr.bf16.mxu1 %v1136_v1 }
 0x14a   :  { %761 = vmatpush3.bf16.msra.mxu1 %v121_v25 }
 0x14d   :  { %763 = vmatmul.mubr.bf16.vlgmr.msra.gmra.mrb[0].mxu1 %v113_v26 }
 0x220   :  { %v161_v28 = vpop.f32.mrb[0].mxu1 }
 0x221   :  { %v162_v29 = vadd.f32 %v643_v27, %v161_v28  ;;  %v764_v30 = vpop.f32.mrb[1].mxu1 }
 0x222   :  { %v164_v31 = vpop.f32.mrb[2].mxu1 }
 0x223   :  { %v167_v32 = vmax.f32 %v162_v29, 0.0  ;;  %v765_v33 = vpop.f32.mrb[3].mxu1 }
 0x224   :  { %1120 = dma.done.wait [#allocation3], 1024 }
 0x225   :  { %1121 = vsyncadd [#allocation3], 4294966272  ;;  %766 = vmatprep.subr.bf16.mxu0 %v1136_v1  ;;  %782 = vmatprep.mubr.msk.bf16.mxu0 %vm1137_vm0, %v1136_v1  ;;  %s1289_s26 = scalar_lea.hbm %s1474_s1, 4096  ;;  %p972_p3 = scmp.lt.u32.totalorder %s1257_s19, %s1474_s1 }
 0x226   :  { %p970_p1 = scmp.ne.s32.totalorder %s1257_s19, %s1289_s26  ;;  %p973_p4 = scmp.lt.u32.totalorder %s1178_s22, %s1289_s26 }
 0x227   :  { %p975_p6 = scmp.lt.u32.totalorder %s1289_s26, %s1257_s19 }
 0x228   :  { %p974_p5 = por %p973_p4, %p972_p3 }
 0x22a   :  { %p976_p2 = por %p975_p6, %p974_p5 }
 0x22c   :  { %p977_p8 = pnand %p976_p2, %p970_p1 }
 0x22e   :  { %980 = shalt.err (!%p977_p8)  }
 0x22f   :  { %992 = shalt.err (!%p1231_p7)  }
 0x230   :  { %181 = dma.hbm_to_vmem [thread:$0]  %s1257_s19, 1024, %s1209_s6, [#allocation3 + $0x1]  ;;  %v182_v42 = vpack.c.bf16 %v167_v32, %v167_v32  ;;  %v644_v43 = vld [vmem:[%s1475_s2 + $0x2] ss:$0 sm:$0xff] }
 0x231   :  { %v183_v34 = vld [vmem:[#allocation2] sm:$0xff]  ;;  %v184_v35 = vld [vmem:[#allocation2 + $0x8] sm:$0xff]  ;;  %v185_v36 = vld [vmem:[#allocation2 + $0x10] sm:$0xff] }
 0x232   :  { %767 = vmatpush3.bf16.msra.mxu0 %v183_v34  ;;  %v186_v37 = vld [vmem:[#allocation2 + $0x18] sm:$0xff]  ;;  %v187_v38 = vld [vmem:[#allocation2 + $0x20] sm:$0xff]  ;;  %v188_v39 = vld [vmem:[#allocation2 + $0x28] sm:$0xff] }
 0x233   :  { %768 = vmatprep.subr.bf16.mxu0 %v1136_v1  ;;  %v189_v40 = vld [vmem:[#allocation2 + $0x30] sm:$0xff]  ;;  %v190_v41 = vld [vmem:[#allocation2 + $0x38] sm:$0xff] }
 0x236   :  { %769 = vmatpush3.bf16.msra.mxu0 %v184_v35 }
 0x237   :  { %770 = vmatprep.subr.bf16.mxu0 %v1136_v1 }
 0x23a   :  { %771 = vmatpush3.bf16.msra.mxu0 %v185_v36 }
 0x23b   :  { %772 = vmatprep.subr.bf16.mxu0 %v1136_v1 }
 0x23e   :  { %773 = vmatpush3.bf16.msra.mxu0 %v186_v37 }
 0x23f   :  { %774 = vmatprep.subr.bf16.mxu0 %v1136_v1 }
 0x242   :  { %775 = vmatpush3.bf16.msra.mxu0 %v187_v38 }
 0x243   :  { %776 = vmatprep.subr.bf16.mxu0 %v1136_v1 }
 0x246   :  { %777 = vmatpush3.bf16.msra.mxu0 %v188_v39 }
 0x247   :  { %778 = vmatprep.subr.bf16.mxu0 %v1136_v1 }
 0x24a   :  { %779 = vmatpush3.bf16.msra.mxu0 %v189_v40 }
 0x24b   :  { %780 = vmatprep.subr.bf16.mxu0 %v1136_v1 }
 0x24e   :  { %781 = vmatpush3.bf16.msra.mxu0 %v190_v41 }
 0x251   :  { %783 = vmatmul.mubr.bf16.vlgmr.msra.gmra.mrb[4].mxu0 %v182_v42 }
 0x324   :  { %v230_v44 = vpop.f32.mrb[4].mxu0 }
 0x325   :  { %v231_v45 = vadd.f32 %v644_v43, %v230_v44  ;;  %v784_v46 = vpop.f32.mrb[5].mxu0 }
 0x326   :  { %v233_v47 = vpop.f32.mrb[6].mxu0 }
 0x327   :  { %v236_v48 = vmax.f32 %v231_v45, 0.0  ;;  %v785_v49 = vpop.f32.mrb[7].mxu0 }
 0x328   :  { %1122 = dma.done.wait [#allocation3 + $0x1], 1024 }
 0x329   :  { %1123 = vsyncadd [#allocation3 + $0x1], 4294966272  ;;  %786 = vmatprep.subr.bf16.mxu1 %v1136_v1  ;;  %802 = vmatprep.mubr.msk.bf16.mxu1 %vm1137_vm0, %v1136_v1  ;;  %s1321_s8 = scalar_lea.hbm %s1474_s1, 5120  ;;  %p997_p11 = scmp.lt.u32.totalorder %s1289_s26, %s1474_s1 }
 0x32a   :  { %p995_p10 = scmp.ne.s32.totalorder %s1289_s26, %s1321_s8  ;;  %p998_p12 = scmp.lt.u32.totalorder %s1178_s22, %s1321_s8 }
 0x32b   :  { %p1000_p0 = scmp.lt.u32.totalorder %s1321_s8, %s1289_s26 }
 0x32c   :  { %p999_p13 = por %p998_p12, %p997_p11 }
 0x32e   :  { %p1001_p1 = por %p1000_p0, %p999_p13 }
 0x330   :  { %p1002_p3 = pnand %p1001_p1, %p995_p10 }
 0x332   :  { %1005 = shalt.err (!%p1002_p3)  }
 0x333   :  { %1017 = shalt.err (!%p1196_p9)  }
 0x334   :  { %250 = dma.hbm_to_vmem [thread:$0]  %s1289_s26, 1024, %s1164_s15, [#allocation3]  ;;  %v251_v58 = vpack.c.bf16 %v236_v48, %v236_v48  ;;  %v645_v59 = vld [vmem:[%s1475_s2 + $0x3] ss:$0 sm:$0xff] }
 0x335   :  { %v252_v50 = vld [vmem:[#allocation2 + $0x40] sm:$0xff]  ;;  %v253_v51 = vld [vmem:[#allocation2 + $0x48] sm:$0xff]  ;;  %v254_v52 = vld [vmem:[#allocation2 + $0x50] sm:$0xff] }
 0x336   :  { %787 = vmatpush3.bf16.msra.mxu1 %v252_v50  ;;  %v255_v53 = vld [vmem:[#allocation2 + $0x58] sm:$0xff]  ;;  %v256_v54 = vld [vmem:[#allocation2 + $0x60] sm:$0xff]  ;;  %v257_v55 = vld [vmem:[#allocation2 + $0x68] sm:$0xff] }
 0x337   :  { %788 = vmatprep.subr.bf16.mxu1 %v1136_v1  ;;  %v258_v56 = vld [vmem:[#allocation2 + $0x70] sm:$0xff]  ;;  %v259_v57 = vld [vmem:[#allocation2 + $0x78] sm:$0xff] }
 0x33a   :  { %789 = vmatpush3.bf16.msra.mxu1 %v253_v51 }
 0x33b   :  { %790 = vmatprep.subr.bf16.mxu1 %v1136_v1 }
 0x33e   :  { %791 = vmatpush3.bf16.msra.mxu1 %v254_v52 }
 0x33f   :  { %792 = vmatprep.subr.bf16.mxu1 %v1136_v1 }
 0x342   :  { %793 = vmatpush3.bf16.msra.mxu1 %v255_v53 }
 0x343   :  { %794 = vmatprep.subr.bf16.mxu1 %v1136_v1 }
 0x346   :  { %795 = vmatpush3.bf16.msra.mxu1 %v256_v54 }
 0x347   :  { %796 = vmatprep.subr.bf16.mxu1 %v1136_v1 }
 0x34a   :  { %797 = vmatpush3.bf16.msra.mxu1 %v257_v55 }
 0x34b   :  { %798 = vmatprep.subr.bf16.mxu1 %v1136_v1 }
 0x34e   :  { %799 = vmatpush3.bf16.msra.mxu1 %v258_v56 }
 0x34f   :  { %800 = vmatprep.subr.bf16.mxu1 %v1136_v1 }
 0x352   :  { %801 = vmatpush3.bf16.msra.mxu1 %v259_v57 }
 0x355   :  { %803 = vmatmul.mubr.bf16.vlgmr.msra.gmra.mrb[4].mxu1 %v251_v58 }
 0x428   :  { %v299_v60 = vpop.f32.mrb[4].mxu1 }
 0x429   :  { %v300_v61 = vadd.f32 %v645_v59, %v299_v60  ;;  %v804_v62 = vpop.f32.mrb[5].mxu1 }
 0x42a   :  { %v302_v63 = vpop.f32.mrb[6].mxu1 }
 0x42b   :  { %v305_v0 = vmax.f32 %v300_v61, 0.0  ;;  %v805_v2 = vpop.f32.mrb[7].mxu1 }
 0x42c   :  { %1124 = dma.done.wait [#allocation3], 1024 }
 0x42d   :  { %1125 = vsyncadd [#allocation3], 4294966272  ;;  %806 = vmatprep.subr.bf16.mxu0 %v1136_v1  ;;  %822 = vmatprep.mubr.msk.bf16.mxu0 %vm1137_vm0, %v1136_v1  ;;  %s1353_s17 = scalar_lea.hbm %s1474_s1, 6144  ;;  %p1022_p5 = scmp.lt.u32.totalorder %s1321_s8, %s1474_s1 }
 0x42e   :  { %p1020_p4 = scmp.ne.s32.totalorder %s1321_s8, %s1353_s17  ;;  %p1023_p6 = scmp.lt.u32.totalorder %s1178_s22, %s1353_s17 }
 0x42f   :  { %p1025_p8 = scmp.lt.u32.totalorder %s1353_s17, %s1321_s8 }
 0x430   :  { %p1024_p2 = por %p1023_p6, %p1022_p5 }
 0x432   :  { %p1026_p10 = por %p1025_p8, %p1024_p2 }
 0x434   :  { %p1027_p11 = pnand %p1026_p10, %p1020_p4 }
 0x436   :  { %1030 = shalt.err (!%p1027_p11)  }
 0x437   :  { %1042 = shalt.err (!%p1231_p7)  }
 0x438   :  { %319 = dma.hbm_to_vmem [thread:$0]  %s1321_s8, 1024, %s1209_s6, [#allocation3 + $0x1]  ;;  %v320_v11 = vpack.c.bf16 %v305_v0, %v305_v0  ;;  %v646_v12 = vld [vmem:[%s1475_s2 + $0x4] ss:$0 sm:$0xff] }
 0x439   :  { %v321_v3 = vld [vmem:[#allocation2] sm:$0xff]  ;;  %v322_v4 = vld [vmem:[#allocation2 + $0x8] sm:$0xff]  ;;  %v323_v5 = vld [vmem:[#allocation2 + $0x10] sm:$0xff] }
 0x43a   :  { %807 = vmatpush3.bf16.msra.mxu0 %v321_v3  ;;  %v324_v6 = vld [vmem:[#allocation2 + $0x18] sm:$0xff]  ;;  %v325_v7 = vld [vmem:[#allocation2 + $0x20] sm:$0xff]  ;;  %v326_v8 = vld [vmem:[#allocation2 + $0x28] sm:$0xff] }
 0x43b   :  { %808 = vmatprep.subr.bf16.mxu0 %v1136_v1  ;;  %v327_v9 = vld [vmem:[#allocation2 + $0x30] sm:$0xff]  ;;  %v328_v10 = vld [vmem:[#allocation2 + $0x38] sm:$0xff] }
 0x43e   :  { %809 = vmatpush3.bf16.msra.mxu0 %v322_v4 }
 0x43f   :  { %810 = vmatprep.subr.bf16.mxu0 %v1136_v1 }
 0x442   :  { %811 = vmatpush3.bf16.msra.mxu0 %v323_v5 }
 0x443   :  { %812 = vmatprep.subr.bf16.mxu0 %v1136_v1 }
 0x446   :  { %813 = vmatpush3.bf16.msra.mxu0 %v324_v6 }
 0x447   :  { %814 = vmatprep.subr.bf16.mxu0 %v1136_v1 }
 0x44a   :  { %815 = vmatpush3.bf16.msra.mxu0 %v325_v7 }
 0x44b   :  { %816 = vmatprep.subr.bf16.mxu0 %v1136_v1 }
 0x44e   :  { %817 = vmatpush3.bf16.msra.mxu0 %v326_v8 }
 0x44f   :  { %818 = vmatprep.subr.bf16.mxu0 %v1136_v1 }
 0x452   :  { %819 = vmatpush3.bf16.msra.mxu0 %v327_v9 }
 0x453   :  { %820 = vmatprep.subr.bf16.mxu0 %v1136_v1 }
 0x456   :  { %821 = vmatpush3.bf16.msra.mxu0 %v328_v10 }
 0x459   :  { %823 = vmatmul.mubr.bf16.vlgmr.msra.gmra.mrb[8].mxu0 %v320_v11 }
 0x52c   :  { %v368_v13 = vpop.f32.mrb[8].mxu0 }
 0x52d   :  { %v369_v14 = vadd.f32 %v646_v12, %v368_v13  ;;  %v824_v15 = vpop.f32.mrb[9].mxu0 }
 0x52e   :  { %v371_v16 = vpop.f32.mrb[10].mxu0 }
 0x52f   :  { %v374_v17 = vmax.f32 %v369_v14, 0.0  ;;  %v825_v18 = vpop.f32.mrb[11].mxu0 }
 0x530   :  { %1126 = dma.done.wait [#allocation3 + $0x1], 1024 }
 0x531   :  { %1127 = vsyncadd [#allocation3 + $0x1], 4294966272  ;;  %826 = vmatprep.subr.bf16.mxu1 %v1136_v1  ;;  %842 = vmatprep.mubr.msk.bf16.mxu1 %vm1137_vm0, %v1136_v1  ;;  %s1385_s24 = scalar_lea.hbm %s1474_s1, 7168  ;;  %p1047_p13 = scmp.lt.u32.totalorder %s1353_s17, %s1474_s1 }
 0x532   :  { %p1045_p12 = scmp.ne.s32.totalorder %s1353_s17, %s1385_s24  ;;  %p1048_p0 = scmp.lt.u32.totalorder %s1178_s22, %s1385_s24 }
 0x533   :  { %p1050_p3 = scmp.lt.u32.totalorder %s1385_s24, %s1353_s17 }
 0x534   :  { %p1049_p1 = por %p1048_p0, %p1047_p13 }
 0x536   :  { %p1051_p4 = por %p1050_p3, %p1049_p1 }
 0x538   :  { %p1052_p5 = pnand %p1051_p4, %p1045_p12 }
 0x53a   :  { %1055 = shalt.err (!%p1052_p5)  }
 0x53b   :  { %1067 = shalt.err (!%p1196_p9)  }
 0x53c   :  { %388 = dma.hbm_to_vmem [thread:$0]  %s1353_s17, 1024, %s1164_s15, [#allocation3]  ;;  %v389_v27 = vpack.c.bf16 %v374_v17, %v374_v17  ;;  %v647_v28 = vld [vmem:[%s1475_s2 + $0x5] ss:$0 sm:$0xff] }
 0x53d   :  { %v390_v19 = vld [vmem:[#allocation2 + $0x40] sm:$0xff]  ;;  %v391_v20 = vld [vmem:[#allocation2 + $0x48] sm:$0xff]  ;;  %v392_v21 = vld [vmem:[#allocation2 + $0x50] sm:$0xff] }
 0x53e   :  { %827 = vmatpush3.bf16.msra.mxu1 %v390_v19  ;;  %v393_v22 = vld [vmem:[#allocation2 + $0x58] sm:$0xff]  ;;  %v394_v23 = vld [vmem:[#allocation2 + $0x60] sm:$0xff]  ;;  %v395_v24 = vld [vmem:[#allocation2 + $0x68] sm:$0xff] }
 0x53f   :  { %828 = vmatprep.subr.bf16.mxu1 %v1136_v1  ;;  %v396_v25 = vld [vmem:[#allocation2 + $0x70] sm:$0xff]  ;;  %v397_v26 = vld [vmem:[#allocation2 + $0x78] sm:$0xff] }
 0x542   :  { %829 = vmatpush3.bf16.msra.mxu1 %v391_v20 }
 0x543   :  { %830 = vmatprep.subr.bf16.mxu1 %v1136_v1 }
 0x546   :  { %831 = vmatpush3.bf16.msra.mxu1 %v392_v21 }
 0x547   :  { %832 = vmatprep.subr.bf16.mxu1 %v1136_v1 }
 0x54a   :  { %833 = vmatpush3.bf16.msra.mxu1 %v393_v22 }
 0x54b   :  { %834 = vmatprep.subr.bf16.mxu1 %v1136_v1 }
 0x54e   :  { %835 = vmatpush3.bf16.msra.mxu1 %v394_v23 }
 0x54f   :  { %836 = vmatprep.subr.bf16.mxu1 %v1136_v1 }
 0x552   :  { %837 = vmatpush3.bf16.msra.mxu1 %v395_v24 }
 0x553   :  { %838 = vmatprep.subr.bf16.mxu1 %v1136_v1 }
 0x556   :  { %839 = vmatpush3.bf16.msra.mxu1 %v396_v25 }
 0x557   :  { %840 = vmatprep.subr.bf16.mxu1 %v1136_v1 }
 0x55a   :  { %841 = vmatpush3.bf16.msra.mxu1 %v397_v26 }
 0x55d   :  { %843 = vmatmul.mubr.bf16.vlgmr.msra.gmra.mrb[8].mxu1 %v389_v27 }
 0x630   :  { %v437_v29 = vpop.f32.mrb[8].mxu1 }
 0x631   :  { %v438_v30 = vadd.f32 %v647_v28, %v437_v29  ;;  %v844_v31 = vpop.f32.mrb[9].mxu1 }
 0x632   :  { %v440_v32 = vpop.f32.mrb[10].mxu1 }
 0x633   :  { %v443_v33 = vmax.f32 %v438_v30, 0.0  ;;  %v845_v34 = vpop.f32.mrb[11].mxu1 }
 0x634   :  { %1128 = dma.done.wait [#allocation3], 1024 }
 0x635   :  { %1129 = vsyncadd [#allocation3], 4294966272  ;;  %846 = vmatprep.subr.bf16.mxu0 %v1136_v1  ;;  %862 = vmatprep.mubr.msk.bf16.mxu0 %vm1137_vm0, %v1136_v1  ;;  %p1070_p9 = scmp.ne.s32.totalorder %s1385_s24, %s1178_s22  ;;  %p1072_p6 = scmp.lt.u32.totalorder %s1385_s24, %s1474_s1 }
 0x636   :  { %p1073_p2 = scmp.lt.u32.totalorder %s1178_s22, %s1178_s22 }
 0x638   :  { %p1074_p8 = por %p1073_p2, %p1072_p6 }
 0x63a   :  { %p1076_p10 = por %p1074_p8, %p1048_p0 }
 0x63c   :  { %p1077_p11 = pnand %p1076_p10, %p1070_p9 }
 0x63e   :  { %1080 = shalt.err (!%p1077_p11)  }
 0x63f   :  { %1092 = shalt.err (!%p1231_p7)  }
 0x640   :  { %457 = dma.hbm_to_vmem [thread:$0]  %s1385_s24, 1024, %s1209_s6, [#allocation3 + $0x1]  ;;  %v458_v43 = vpack.c.bf16 %v443_v33, %v443_v33  ;;  %v648_v44 = vld [vmem:[%s1475_s2 + $0x6] ss:$0 sm:$0xff] }
 0x641   :  { %v459_v35 = vld [vmem:[#allocation2] sm:$0xff]  ;;  %v460_v36 = vld [vmem:[#allocation2 + $0x8] sm:$0xff]  ;;  %v461_v37 = vld [vmem:[#allocation2 + $0x10] sm:$0xff] }
 0x642   :  { %847 = vmatpush3.bf16.msra.mxu0 %v459_v35  ;;  %v462_v38 = vld [vmem:[#allocation2 + $0x18] sm:$0xff]  ;;  %v463_v39 = vld [vmem:[#allocation2 + $0x20] sm:$0xff]  ;;  %v464_v40 = vld [vmem:[#allocation2 + $0x28] sm:$0xff] }
 0x643   :  { %848 = vmatprep.subr.bf16.mxu0 %v1136_v1  ;;  %v465_v41 = vld [vmem:[#allocation2 + $0x30] sm:$0xff]  ;;  %v466_v42 = vld [vmem:[#allocation2 + $0x38] sm:$0xff] }
 0x646   :  { %849 = vmatpush3.bf16.msra.mxu0 %v460_v36 }
 0x647   :  { %850 = vmatprep.subr.bf16.mxu0 %v1136_v1 }
 0x64a   :  { %851 = vmatpush3.bf16.msra.mxu0 %v461_v37 }
 0x64b   :  { %852 = vmatprep.subr.bf16.mxu0 %v1136_v1 }
 0x64e   :  { %853 = vmatpush3.bf16.msra.mxu0 %v462_v38 }
 0x64f   :  { %854 = vmatprep.subr.bf16.mxu0 %v1136_v1 }
 0x652   :  { %855 = vmatpush3.bf16.msra.mxu0 %v463_v39 }
 0x653   :  { %856 = vmatprep.subr.bf16.mxu0 %v1136_v1 }
 0x656   :  { %857 = vmatpush3.bf16.msra.mxu0 %v464_v40 }
 0x657   :  { %858 = vmatprep.subr.bf16.mxu0 %v1136_v1 }
 0x65a   :  { %859 = vmatpush3.bf16.msra.mxu0 %v465_v41 }
 0x65b   :  { %860 = vmatprep.subr.bf16.mxu0 %v1136_v1 }
 0x65e   :  { %861 = vmatpush3.bf16.msra.mxu0 %v466_v42 }
 0x661   :  { %863 = vmatmul.mubr.bf16.vlgmr.msra.gmra.mrb[12].mxu0 %v458_v43 }
 0x734   :  { %v506_v45 = vpop.f32.mrb[12].mxu0 }
 0x735   :  { %v507_v46 = vadd.f32 %v648_v44, %v506_v45  ;;  %v864_v47 = vpop.f32.mrb[13].mxu0 }
 0x736   :  { %v509_v48 = vpop.f32.mrb[14].mxu0 }
 0x737   :  { %v512_v49 = vmax.f32 %v507_v46, 0.0  ;;  %v865_v50 = vpop.f32.mrb[15].mxu0 }
 0x738   :  { %1130 = dma.done.wait [#allocation3 + $0x1], 1024 }
 0x739   :  { %1131 = vsyncadd [#allocation3 + $0x1], 4294966272  ;;  %866 = vmatprep.subr.bf16.mxu1 %v1136_v1  ;;  %882 = vmatprep.mubr.msk.bf16.mxu1 %vm1137_vm0, %v1136_v1  ;;  %v516_v51 = vld [vmem:[#allocation2 + $0x40] sm:$0xff]  ;;  %v517_v52 = vld [vmem:[#allocation2 + $0x48] sm:$0xff]  ;;  %v515_v59 = vpack.c.bf16 %v512_v49, %v512_v49  ;;  %v600_v19 = vlaneseq  ;;  %s1138_s8 = smov [#allocation4]  }
 0x73a   :  { %867 = vmatpush3.bf16.msra.mxu1 %v516_v51  ;;  %v518_v53 = vld [vmem:[#allocation2 + $0x50] sm:$0xff]  ;;  %v519_v54 = vld [vmem:[#allocation2 + $0x58] sm:$0xff]  ;;  %v520_v55 = vld [vmem:[#allocation2 + $0x60] sm:$0xff]  ;;  %s621_s9 = sshll.u32 %s1138_s8, 4  ;;  %s622_s9 = int_to_ptr.vmem [resolvable:$true] %s621_s9 }
 0x73b   :  { %868 = vmatprep.subr.bf16.mxu1 %v1136_v1  ;;  %v521_v56 = vld [vmem:[#allocation2 + $0x68] sm:$0xff]  ;;  %v522_v57 = vld [vmem:[#allocation2 + $0x70] sm:$0xff]  ;;  %v523_v58 = vld [vmem:[#allocation2 + $0x78] sm:$0xff]  ;;  %v601_v22 = vand.u32 127, %v600_v19  ;;  %p1099_p12 = scmp.lt.s32.totalorder %s622_s9, %s622_s9 }
 0x73c   :  { %v649_v60 = vld [vmem:[%s1475_s2 + $0x7] ss:$0 sm:$0xff]  ;;  %v650_v21 = vld [vmem:[%s1475_s2 + $0x8] ss:$0 sm:$0xff]  ;;  %v651_v24 = vld [vmem:[%s1475_s2 + $0x9] ss:$0 sm:$0xff] }
 0x73d   :  { %vm602_vm1 = vcmp.lt.s32.totalorder %v601_v22, 6  ;;  %s1094_s2 = scalar_lea.vmem %s622_s9, 128 }
 0x73e   :  { %869 = vmatpush3.bf16.msra.mxu1 %v517_v52  ;;  %p1095_p7 = scmp.ne.s32.totalorder %s622_s9, %s1094_s2  ;;  %p1100_p13 = scmp.lt.s32.totalorder %s1094_s2, %s1094_s2 }
 0x73f   :  { %870 = vmatprep.subr.bf16.mxu1 %v1136_v1 }
 0x740   :  { %p1101_p0 = por %p1100_p13, %p1099_p12 }
 0x742   :  { %871 = vmatpush3.bf16.msra.mxu1 %v518_v53  ;;  %p1102_p1 = pnand %p1101_p0, %p1095_p7 }
 0x743   :  { %872 = vmatprep.subr.bf16.mxu1 %v1136_v1 }
 0x746   :  { %873 = vmatpush3.bf16.msra.mxu1 %v519_v54 }
 0x747   :  { %874 = vmatprep.subr.bf16.mxu1 %v1136_v1 }
 0x74a   :  { %875 = vmatpush3.bf16.msra.mxu1 %v520_v55 }
 0x74b   :  { %876 = vmatprep.subr.bf16.mxu1 %v1136_v1 }
 0x74e   :  { %877 = vmatpush3.bf16.msra.mxu1 %v521_v56 }
 0x74f   :  { %878 = vmatprep.subr.bf16.mxu1 %v1136_v1 }
 0x752   :  { %879 = vmatpush3.bf16.msra.mxu1 %v522_v57 }
 0x753   :  { %880 = vmatprep.subr.bf16.mxu1 %v1136_v1 }
 0x756   :  { %881 = vmatpush3.bf16.msra.mxu1 %v523_v58 }
 0x759   :  { %883 = vmatmul.mubr.bf16.vlgmr.msra.gmra.mrb[12].mxu1 %v515_v59 }
 0x82c   :  { %v563_v61 = vpop.f32.mrb[12].mxu1 }
 0x82d   :  { %v564_v62 = vadd.f32 %v649_v60, %v563_v61  ;;  %v884_v63 = vpop.f32.mrb[13].mxu1 }
 0x82e   :  { %v566_v0 = vpop.f32.mrb[14].mxu1 }
 0x82f   :  { %v569_v2 = vrot.slane %v564_v62, 4  ;;  %v885_v3 = vpop.f32.mrb[15].mxu1 }
 0x831   :  { %v570_v4 = vadd.f32 %v569_v2, %v564_v62 }
 0x833   :  { %v571_v5 = vrot.slane %v570_v4, 2 }
 0x835   :  { %v572_v6 = vadd.f32 %v571_v5, %v570_v4 }
 0x837   :  { %v573_v7 = vrot.slane %v572_v6, 1 }
 0x839   :  { %v574_v8 = vadd.f32 %v573_v7, %v572_v6 }
 0x83b   :  { %v575_v1 = vmul.f32 0.125, %v574_v8 }
 0x83d   :  { %v576_v9 = vsub.f32 %v564_v62, %v575_v1 }
 0x83f   :  { %v577_v10 = vmul.f32 %v576_v9, %v576_v9 }
 0x841   :  { %v578_v11 = vrot.slane %v577_v10, 4 }
 0x843   :  { %v579_v12 = vadd.f32 %v578_v11, %v577_v10 }
 0x845   :  { %v580_v13 = vrot.slane %v579_v12, 2 }
 0x847   :  { %v581_v14 = vadd.f32 %v580_v13, %v579_v12 }
 0x849   :  { %v582_v15 = vrot.slane %v581_v14, 1 }
 0x84b   :  { %v583_v16 = vadd.f32 %v582_v15, %v581_v14 }
 0x84d   :  { %v584_v17 = vmul.f32 0.125, %v583_v16 }
 0x84f   :  { %v585_v18 = vadd.f32 1e-05, %v584_v17 }
 0x851   :  { %891 = vrsqrt.f32 %v585_v18 }
 0x85b   :  { %v892_v20 = vpop.eup %891 }
 0x85c   :  { %v587_v23 = vmul.f32 %v892_v20, %v576_v9 }
 0x85e   :  { %v593_v25 = vmul.f32 %v650_v21, %v587_v23 }
 0x860   :  { %v599_v26 = vadd.f32 %v651_v24, %v593_v25 }
 0x862   :  { %v603_v27 = vsel %vm602_vm1, %v599_v26, -1e+30 }
 0x863   :  { %604 = vmax.xlane.f32.xlu0 %v603_v27 }
 0x8f0   :  { %v605_v28 = vpop.xlane.xlu0 %604 }
 0x8f1   :  { %v606_v29 = vsub.f32 %v603_v27, %v605_v28 }
 0x8f3   :  { %v607_v30 = vmul.f32 1.442695, %v606_v29 }
 0x8f5   :  { %893 = vpow2.f32 %v607_v30 }
 0x8ff   :  { %v894_v31 = vpop.eup %893 }
 0x900   :  { %v609_v32 = vsel %vm602_vm1, %v894_v31, 0.0 }
 0x901   :  { %610 = vadd.xlane.f32.xlu0 %v609_v32 }
 0x98e   :  { %v611_v33 = vpop.xlane.xlu0 %610 }
 0x98f   :  { %895 = vrcp.f32 %v611_v33 }
 0x999   :  { %v896_v34 = vpop.eup %895 }
 0x99a   :  { %v613_v35 = vmul.f32 %v896_v34, %v609_v32 }
 0x99c   :  { %614 = vst [vmem:[#allocation4] sm:$0xff] %v613_v35 }
 0x99d   :  { %1105 = shalt.err (!%p1102_p1)
}
 0x99e   :  { %s1106_s12 = scalar_lea.hbm %s1476_s3, 128 }
 0x99f   :  { %p1107_p3 = scmp.ne.s32.totalorder %s1476_s3, %s1106_s12  ;;  %p1110_p4 = scmp.lt.u32.totalorder %s1106_s12, %s1476_s3 }
 0x9a1   :  { %p1112_p5 = pnand %p1110_p4, %p1107_p3 }
 0x9a3   :  { %1115 = shalt.err (!%p1112_p5)
}
 0x9a4   :  { %624 = dma.vmem_to_hbm [thread:$0]  %s622_s9, 128, %s1476_s3, [#allocation5]  }
 0x9a5   :  { %1132 = dma.done.wait [#allocation5], 128  }
 0x9a6   :  { %1133 = vsyncadd [#allocation5], 4294967168 }
 0x9a7   :  { %628 = vsyncpa [#allocation5], 1 }
 0x9a8   :  { %629 = vsyncmov [#allocation3] }
 0x9ab   :  { %s630_s21 = vpop.sfrf %629 }
 0x9ac   :  { %p652_p9 = scmp.ne.s32.totalorder %s630_s21, 0 }
 0x9ae   :  { %634 = shalt.err (%p652_p9)  }
 0x9af   :  { %636 = vsyncmov [#allocation3 + $0x1] }
 0x9b2   :  { %s637_s0 = vpop.sfrf %636 }
 0x9b3   :  { %p653_p6 = scmp.ne.s32.totalorder %s637_s0, 0 }
 0x9b5   :  { %641 = shalt.err (%p653_p6)  }

</bundles_post_ra>
